<compile_context>
chip_gen: v7x
topology: tpu7x:2x2x1
jax: 0.10.0
libtpu: 0.0.40
codegen_flags: <defaults>
</compile_context>

<pallas_src>
import functools
import math

import jax
import jax.numpy as jnp
from jax import lax
from jax.experimental import pallas as pl
from jax.experimental.pallas import tpu as pltpu


_MASK_VALUE = -1e30   # large negative instead of -inf: exp() underflows to 0, no NaNs
_VMEM_LIMIT = 48 * 1024 * 1024


def _round_up(x, m):
    return (x + m - 1) // m * m


# ---------------------------------------------------------------------------
# Kernel 1: fused K/V projection   kv = x @ [W_key | W_value]
# ---------------------------------------------------------------------------
def _kv_proj_kernel(x_ref, w_ref, kv_ref):
    kv_ref[...] = jnp.dot(
        x_ref[...], w_ref[...], preferred_element_type=jnp.float32
    ).astype(kv_ref.dtype)


# ---------------------------------------------------------------------------
# Kernel 2: flash-attention loop over the precomputed (hoisted) K/V
# ---------------------------------------------------------------------------
def _make_flash_kernel(seq_len, d_out_p, block_kv, scale, needs_mask, first_pad_tile):
    """seq_len / d_out_p / block_kv / scale / mask info are static (closed over)."""

    def kernel(xq_ref, kv_ref, wq_ref, o_ref, q_sc, m_sc, l_sc, acc_sc):
        ki = pl.program_id(1)
        last_k = pl.num_programs(1) - 1

        # ---- init (once per q tile): project Q and fold in the softmax scale ----
        @pl.when(ki == 0)
        def _init():
            q = jnp.dot(xq_ref[...], wq_ref[...],
                        preferred_element_type=jnp.float32)
            q_sc[...] = q * scale
            m_sc[...] = jnp.full(m_sc.shape, -jnp.inf, dtype=m_sc.dtype)
            l_sc[...] = jnp.zeros(l_sc.shape, dtype=l_sc.dtype)
            acc_sc[...] = jnp.zeros(acc_sc.shape, dtype=acc_sc.dtype)

        # ---- fused K/V tile: the k/v split is a free 128-aligned lane slice ----
        kv = kv_ref[...]
        k = kv[:, :d_out_p]
        v = kv[:, d_out_p:]

        # ---- scores: contract the feature dim directly (no K transpose) ----
        s = lax.dot_general(q_sc[...].astype(k.dtype), k,
                            (((1,), (1,)), ((), ())),
                            preferred_element_type=jnp.float32)      # (tq, tk)

        def update(scores):
            m_prev = m_sc[...]
            m_new = jnp.maximum(m_prev, jnp.max(scores, axis=-1, keepdims=True))
            alpha = jnp.exp(m_prev - m_new)
            p = jnp.exp(scores - m_new)
            l_sc[...] = alpha * l_sc[...] + jnp.sum(p, axis=-1, keepdims=True)
            acc_sc[...] = alpha * acc_sc[...] + jnp.dot(
                p.astype(v.dtype), v, preferred_element_type=jnp.float32)
            m_sc[...] = m_new

        def masked_update():
            kv_pos = ki * block_kv + lax.broadcasted_iota(jnp.int32, s.shape, 1)
            update(jnp.where(kv_pos < seq_len, s, _MASK_VALUE))

        if not needs_mask:
            # Sequence is tile aligned: never emit the mask code at all.
            update(s)
        elif first_pad_tile == 0:
            # Every kv tile contains padded positions (seq_len < block_kv).
            masked_update()
        else:
            # Only kv tiles >= first_pad_tile contain padded key positions, so the
            # iota/compare/select only executes there.
            @pl.when(ki < first_pad_tile)
            def _unmasked():
                update(s)

            @pl.when(ki >= first_pad_tile)
            def _masked():
                masked_update()

        # ---- finalize (last kv tile): normalize with the EUP reciprocal ----
        @pl.when(ki == last_k)
        def _finalize():
            l = l_sc[...]
            inv_l = pl.reciprocal(l, approx=True)
            # One Newton step on the tiny (tq, 1) denominator -> ~f32-exact
            # without a VALU divide over the (tq, d) accumulator.
            inv_l = inv_l * (2.0 - l * inv_l)
            o_ref[...] = (acc_sc[...] * inv_l).astype(o_ref.dtype)

    return kernel


@functools.partial(jax.jit, static_argnames=("block_q", "block_kv", "use_bf16"))
def self_attention_v1(x, w_query, w_key, w_value, *, block_q=256, block_kv=512,
                      use_bf16=False):
    """SelfAttention_v1.forward(x) with trainable weights passed explicitly."""
    seq_len, d_in = x.shape
    d_out = w_query.shape[1]
    scale = 1.0 / float(d_out) ** 0.5  # uses the ORIGINAL d_out (matches torch ref)

    # Lane-dense padding of the feature dims; sequence padded to the tile grid.
    d_in_p = _round_up(d_in, 128)
    d_out_p = _round_up(d_out, 128)

    # Clamp tiles for short sequences (avoid huge mostly-padded tiles) and make
    # sure both tile sizes divide the padded sequence length.
    t_pad = _round_up(seq_len, 128)
    block_q = min(block_q, t_pad)
    block_kv = min(block_kv, t_pad)
    if t_pad % block_q:
        block_q = math.gcd(block_q, t_pad)
    if t_pad % block_kv:
        block_kv = math.gcd(block_kv, t_pad)
    assert t_pad % block_q == 0 and t_pad % block_kv == 0
    num_q = t_pad // block_q
    num_kv = t_pad // block_kv

    # bf16 matmul operands (f32 accumulation) is the standard flash recipe on
    # v6e/v7x; off by default to keep the module's f32 numerics.
    mm_dtype = jnp.bfloat16 if use_bf16 else x.dtype

    x_p = jnp.zeros((t_pad, d_in_p), mm_dtype).at[:seq_len, :d_in].set(
        x.astype(mm_dtype))

    def pad_w(w):
        return jnp.zeros((d_in_p, d_out_p), mm_dtype).at[:d_in, :d_out].set(
            w.astype(mm_dtype))

    w_q_p = pad_w(w_query)                                            # (d_in_p, d_out_p)
    w_kv_p = jnp.concatenate([pad_w(w_key), pad_w(w_value)], axis=1)  # (d_in_p, 2*d_out_p)

    # ---- step 1: project K/V once (hoisted out of the (qi, ki) flash loop) ----
    kv = pl.pallas_call(
        _kv_proj_kernel,
        out_shape=jax.ShapeDtypeStruct((t_pad, 2 * d_out_p), mm_dtype),
        grid_spec=pltpu.PrefetchScalarGridSpec(
            num_scalar_prefetch=0,
            grid=(num_kv,),
            in_specs=[
                pl.BlockSpec((block_kv, d_in_p), lambda i: (i, 0)),
                pl.BlockSpec((d_in_p, 2 * d_out_p), lambda i: (0, 0)),
            ],
            out_specs=pl.BlockSpec((block_kv, 2 * d_out_p), lambda i: (i, 0)),
        ),
        compiler_params=pltpu.CompilerParams(
            dimension_semantics=("parallel",),
            vmem_limit_bytes=_VMEM_LIMIT,
        ),
    )(x_p, w_kv_p)

    # ---- step 2: flash-attention over the precomputed K/V ----
    needs_mask = t_pad != seq_len
    first_pad_tile = seq_len // block_kv

    kernel = _make_flash_kernel(seq_len, d_out_p, block_kv, scale,
                                needs_mask, first_pad_tile)

    out_padded = pl.pallas_call(
        kernel,
        out_shape=jax.ShapeDtypeStruct((t_pad, d_out_p), x.dtype),
        grid_spec=pltpu.PrefetchScalarGridSpec(
            num_scalar_prefetch=0,
            grid=(num_q, num_kv),                        # kv (reduction) axis last
            in_specs=[
                pl.BlockSpec((block_q, d_in_p), lambda qi, ki: (qi, 0)),        # x (for Q)
                pl.BlockSpec((block_kv, 2 * d_out_p), lambda qi, ki: (ki, 0)),  # fused K/V
                pl.BlockSpec((d_in_p, d_out_p), lambda qi, ki: (0, 0)),         # W_query
            ],
            out_specs=pl.BlockSpec((block_q, d_out_p), lambda qi, ki: (qi, 0)),
            scratch_shapes=[
                pltpu.VMEM((block_q, d_out_p), jnp.float32),  # scaled Q
                pltpu.VMEM((block_q, 1), jnp.float32),        # running max m
                pltpu.VMEM((block_q, 1), jnp.float32),        # running sum l
                pltpu.VMEM((block_q, d_out_p), jnp.float32),  # output accumulator
            ],
        ),
        compiler_params=pltpu.CompilerParams(
            dimension_semantics=("parallel", "arbitrary"),
            vmem_limit_bytes=_VMEM_LIMIT,
        ),
    )(x_p, kv, w_q_p)

    return out_padded[:seq_len, :d_out]


def reference(x, wq, wk, wv):
    hi = lax.Precision.HIGHEST
    q = jnp.dot(x, wq, precision=hi)
    k = jnp.dot(x, wk, precision=hi)
    v = jnp.dot(x, wv, precision=hi)
    scores = jnp.dot(q, k.T, precision=hi) / (k.shape[-1] ** 0.5)
    w = jax.nn.softmax(scores, axis=-1)
    return jnp.dot(w, v, precision=hi)


if __name__ == "__main__":
    # --- Test 1: the chapter's exact inputs (seq_len=6, d_in=3, d_out=2) ---
    x = jnp.array(
        [[0.43, 0.15, 0.89],
         [0.55, 0.87, 0.66],
         [0.57, 0.85, 0.64],
         [0.22, 0.58, 0.33],
         [0.77, 0.25, 0.10],
         [0.05, 0.80, 0.55]],
        dtype=jnp.float32,
    )
    d_in, d_out = 3, 2

    key = jax.random.PRNGKey(0)
    kq, kk, kval = jax.random.split(key, 3)
    # Mirrors torch.rand(d_in, d_out): uniform [0, 1).
    w_query = jax.random.uniform(kq, (d_in, d_out), dtype=jnp.float32)
    w_key = jax.random.uniform(kk, (d_in, d_out), dtype=jnp.float32)
    w_value = jax.random.uniform(kval, (d_in, d_out), dtype=jnp.float32)

    out = jax.block_until_ready(self_attention_v1(x, w_query, w_key, w_value))
    ref = reference(x, w_query, w_key, w_value)
    assert out.shape == (x.shape[0], d_out)
    assert jnp.allclose(out, ref, atol=1e-5, rtol=1e-5), "mismatch vs reference (toy)"

    # --- Test 2: single-tile grid + kv-padding mask (seq not a multiple of 128) ---
    k1, k2, k3, k4 = jax.random.split(jax.random.PRNGKey(0), 4)
    T2, din2, dout2 = 200, 16, 32
    x2 = jax.random.normal(k1, (T2, din2), dtype=jnp.float32)
    wq2 = jax.random.uniform(k2, (din2, dout2), dtype=jnp.float32)
    wk2 = jax.random.uniform(k3, (din2, dout2), dtype=jnp.float32)
    wv2 = jax.random.uniform(k4, (din2, dout2), dtype=jnp.float32)
    out2 = jax.block_until_ready(self_attention_v1(x2, wq2, wk2, wv2))
    ref2 = reference(x2, wq2, wk2, wv2)
    assert out2.shape == (T2, dout2)
    assert jnp.allclose(out2, ref2, atol=2e-4, rtol=2e-4), "mismatch vs reference (pad)"

    # --- Test 3: multi-tile grid (4 q tiles x 2 kv tiles): exercises hoisted K/V
    #     reuse, partial-tile masking on the last kv tile, and the online softmax. ---
    k5, k6, k7, k8 = jax.random.split(jax.random.PRNGKey(1), 4)
    T3, din3, dout3 = 1000, 64, 64
    x3 = jax.random.normal(k5, (T3, din3), dtype=jnp.float32)
    wq3 = jax.random.uniform(k6, (din3, dout3), dtype=jnp.float32)
    wk3 = jax.random.uniform(k7, (din3, dout3), dtype=jnp.float32)
    wv3 = jax.random.uniform(k8, (din3, dout3), dtype=jnp.float32)
    out3 = jax.block_until_ready(
        self_attention_v1(x3, wq3, wk3, wv3, block_q=256, block_kv=512))
    ref3 = reference(x3, wq3, wk3, wv3)
    assert out3.shape == (T3, dout3)
    assert jnp.allclose(out3, ref3, atol=1e-3, rtol=1e-3), "mismatch vs reference (tiled)"

    print("KERNEL_OK")
</pallas_src>

<mosaic_0001>
module attributes {stable_mosaic.version = 11 : i64} {
  func.func @kernel(%arg0: i32, %arg1: i32, %arg2: memref<128x128xf32, #tpu.memory_space<vmem>>, %arg3: memref<128x256xf32, #tpu.memory_space<vmem>>, %arg4: memref<128x128xf32, #tpu.memory_space<vmem>>, %arg5: memref<128x128xf32, #tpu.memory_space<vmem>>, %arg6: memref<128x128xf32, #tpu.memory_space<vmem>>, %arg7: memref<128x1xf32, #tpu.memory_space<vmem>>, %arg8: memref<128x1xf32, #tpu.memory_space<vmem>>, %arg9: memref<128x128xf32, #tpu.memory_space<vmem>>) attributes {dimension_semantics = [#tpu.dimension_semantics<parallel>, #tpu.dimension_semantics<arbitrary>], iteration_bounds = array<i64: 1, 1>, scalar_prefetch = 0 : i64, scratch_operands = 4 : i64, tpu.core_type = #tpu.core_type<tc>, window_params = [{transform_indices = @transform_0, window_bounds = array<i64: 128, 128>}, {transform_indices = @transform_1, window_bounds = array<i64: 128, 256>}, {pipeline_mode = #tpu.pipeline_mode<synchronous>, transform_indices = @transform_2, window_bounds = array<i64: 128, 128>}, {transform_indices = @transform_3, window_bounds = array<i64: 128, 128>}]} {
    %c0_i32 = arith.constant 0 : i32
    %0 = arith.cmpi eq, %arg1, %c0_i32 : i32
    %1 = arith.extui %0 : i1 to i32
    %c0_i32_0 = arith.constant 0 : i32
    %2 = arith.cmpi ne, %1, %c0_i32_0 : i32
    scf.if %2 {
      %c0_22 = arith.constant 0 : index
      %c0_23 = arith.constant 0 : index
      %41 = vector.load %arg2[%c0_22, %c0_23] : memref<128x128xf32, #tpu.memory_space<vmem>>, vector<128x128xf32>
      %c0_24 = arith.constant 0 : index
      %c0_25 = arith.constant 0 : index
      %42 = vector.load %arg4[%c0_24, %c0_25] : memref<128x128xf32, #tpu.memory_space<vmem>>, vector<128x128xf32>
      %cst_26 = arith.constant dense<0.000000e+00> : vector<128x128xf32>
      %43 = tpu.matmul %41, %42, %cst_26 {dimension_numbers = #tpu.dot_dimension_numbers<[1], [0], [0], [1], [0, 0, 1, 1], [], []>} : vector<128x128xf32>, vector<128x128xf32>, vector<128x128xf32> -> vector<128x128xf32>
      %cst_27 = arith.constant 0.707106769 : f32
      %44 = vector.broadcast %cst_27 : f32 to vector<128x128xf32>
      %45 = arith.mulf %43, %44 : vector<128x128xf32>
      %c0_28 = arith.constant 0 : index
      %c0_29 = arith.constant 0 : index
      %46 = vector.load %arg6[%c0_28, %c0_29] : memref<128x128xf32, #tpu.memory_space<vmem>>, vector<128x128xf32>
      tpu.vector_store %arg6[%c0_28, %c0_29], %45 {strides = array<i32>} : memref<128x128xf32, #tpu.memory_space<vmem>>, vector<128x128xf32>,
      %cst_30 = arith.constant 0xFF800000 : f32
      %47 = vector.broadcast %cst_30 : f32 to vector<128x1xf32>
      %c0_31 = arith.constant 0 : index
      %c0_32 = arith.constant 0 : index
      %48 = vector.load %arg7[%c0_31, %c0_32] : memref<128x1xf32, #tpu.memory_space<vmem>>, vector<128x1xf32>
      tpu.vector_store %arg7[%c0_31, %c0_32], %47 {strides = array<i32>} : memref<128x1xf32, #tpu.memory_space<vmem>>, vector<128x1xf32>,
      %cst_33 = arith.constant 0.000000e+00 : f32
      %49 = vector.broadcast %cst_33 : f32 to vector<128x1xf32>
      %c0_34 = arith.constant 0 : index
      %c0_35 = arith.constant 0 : index
      %50 = vector.load %arg8[%c0_34, %c0_35] : memref<128x1xf32, #tpu.memory_space<vmem>>, vector<128x1xf32>
      tpu.vector_store %arg8[%c0_34, %c0_35], %49 {strides = array<i32>} : memref<128x1xf32, #tpu.memory_space<vmem>>, vector<128x1xf32>,
      %cst_36 = arith.constant 0.000000e+00 : f32
      %51 = vector.broadcast %cst_36 : f32 to vector<128x128xf32>
      %c0_37 = arith.constant 0 : index
      %c0_38 = arith.constant 0 : index
      %52 = vector.load %arg9[%c0_37, %c0_38] : memref<128x128xf32, #tpu.memory_space<vmem>>, vector<128x128xf32>
      tpu.vector_store %arg9[%c0_37, %c0_38], %51 {strides = array<i32>} : memref<128x128xf32, #tpu.memory_space<vmem>>, vector<128x128xf32>,
    } else {
    }
    %c0 = arith.constant 0 : index
    %c0_1 = arith.constant 0 : index
    %3 = vector.load %arg3[%c0, %c0_1] : memref<128x256xf32, #tpu.memory_space<vmem>>, vector<128x256xf32>
    %4 = vector.extract_strided_slice %3 {offsets = [0, 0], sizes = [128, 128], strides = [1, 1]} : vector<128x256xf32> to vector<128x128xf32>
    %5 = vector.extract_strided_slice %3 {offsets = [0, 128], sizes = [128, 128], strides = [1, 1]} : vector<128x256xf32> to vector<128x128xf32>
    %c0_2 = arith.constant 0 : index
    %c0_3 = arith.constant 0 : index
    %6 = vector.load %arg6[%c0_2, %c0_3] : memref<128x128xf32, #tpu.memory_space<vmem>>, vector<128x128xf32>
    %cst = arith.constant dense<0.000000e+00> : vector<128x128xf32>
    %7 = tpu.matmul %6, %4, %cst {dimension_numbers = #tpu.dot_dimension_numbers<[1], [1], [0], [0], [0, 0, 1, 0], [], []>} : vector<128x128xf32>, vector<128x128xf32>, vector<128x128xf32> -> vector<128x128xf32>
    %c128_i32 = arith.constant 128 : i32
    %8 = arith.muli %arg1, %c128_i32 : i32
    %9 = tpu.iota {dimensions = array<i32: 1>} : vector<128x128xi32>
    %10 = vector.broadcast %8 : i32 to vector<128x128xi32>
    %11 = arith.addi %10, %9 : vector<128x128xi32>
    %c6_i32 = arith.constant 6 : i32
    %12 = vector.broadcast %c6_i32 : i32 to vector<128x128xi32>
    %13 = arith.cmpi slt, %11, %12 : vector<128x128xi32>
    %cst_4 = arith.constant -1.000000e+30 : f32
    %14 = vector.broadcast %cst_4 : f32 to vector<128x128xf32>
    %15 = arith.select %13, %7, %14 : vector<128x128xi1>, vector<128x128xf32>
    %c0_5 = arith.constant 0 : index
    %c0_6 = arith.constant 0 : index
    %16 = vector.load %arg7[%c0_5, %c0_6] : memref<128x1xf32, #tpu.memory_space<vmem>>, vector<128x1xf32>
    %cst_7 = arith.constant dense<0xFF800000> : vector<128xf32>
    %17 = vector.multi_reduction <maximumf>, %15, %cst_7 [1] : vector<128x128xf32> to vector<128xf32>
    %18 = vector.shape_cast %17 : vector<128xf32> to vector<128x1xf32>
    %19 = arith.maximumf %16, %18 : vector<128x1xf32>
    %20 = arith.subf %16, %19 : vector<128x1xf32>
    %21 = math.exp %20 : vector<128x1xf32>
    %22 = vector.broadcast %19 : vector<128x1xf32> to vector<128x128xf32>
    %23 = arith.subf %15, %22 : vector<128x128xf32>
    %24 = math.exp %23 : vector<128x128xf32>
    %c0_8 = arith.constant 0 : index
    %c0_9 = arith.constant 0 : index
    %25 = vector.load %arg8[%c0_8, %c0_9] : memref<128x1xf32, #tpu.memory_space<vmem>>, vector<128x1xf32>
    %26 = arith.mulf %21, %25 : vector<128x1xf32>
    %cst_10 = arith.constant dense<0.000000e+00> : vector<128xf32>
    %27 = vector.multi_reduction <add>, %24, %cst_10 [1] : vector<128x128xf32> to vector<128xf32>
    %28 = vector.shape_cast %27 : vector<128xf32> to vector<128x1xf32>
    %29 = arith.addf %26, %28 : vector<128x1xf32>
    %c0_11 = arith.constant 0 : index
    %c0_12 = arith.constant 0 : index
    %30 = vector.load %arg8[%c0_11, %c0_12] : memref<128x1xf32, #tpu.memory_space<vmem>>, vector<128x1xf32>
    tpu.vector_store %arg8[%c0_11, %c0_12], %29 {strides = array<i32>} : memref<128x1xf32, #tpu.memory_space<vmem>>, vector<128x1xf32>,
    %c0_13 = arith.constant 0 : index
    %c0_14 = arith.constant 0 : index
    %31 = vector.load %arg9[%c0_13, %c0_14] : memref<128x128xf32, #tpu.memory_space<vmem>>, vector<128x128xf32>
    %32 = vector.broadcast %21 : vector<128x1xf32> to vector<128x128xf32>
    %33 = arith.mulf %32, %31 : vector<128x128xf32>
    %cst_15 = arith.constant dense<0.000000e+00> : vector<128x128xf32>
    %34 = tpu.matmul %24, %5, %cst_15 {dimension_numbers = #tpu.dot_dimension_numbers<[1], [0], [0], [1], [0, 0, 1, 1], [], []>} : vector<128x128xf32>, vector<128x128xf32>, vector<128x128xf32> -> vector<128x128xf32>
    %35 = arith.addf %33, %34 : vector<128x128xf32>
    %c0_16 = arith.constant 0 : index
    %c0_17 = arith.constant 0 : index
    %36 = vector.load %arg9[%c0_16, %c0_17] : memref<128x128xf32, #tpu.memory_space<vmem>>, vector<128x128xf32>
    tpu.vector_store %arg9[%c0_16, %c0_17], %35 {strides = array<i32>} : memref<128x128xf32, #tpu.memory_space<vmem>>, vector<128x128xf32>,
    %c0_18 = arith.constant 0 : index
    %c0_19 = arith.constant 0 : index
    %37 = vector.load %arg7[%c0_18, %c0_19] : memref<128x1xf32, #tpu.memory_space<vmem>>, vector<128x1xf32>
    tpu.vector_store %arg7[%c0_18, %c0_19], %19 {strides = array<i32>} : memref<128x1xf32, #tpu.memory_space<vmem>>, vector<128x1xf32>,
    %c0_i32_20 = arith.constant 0 : i32
    %38 = arith.cmpi eq, %arg1, %c0_i32_20 : i32
    %39 = arith.extui %38 : i1 to i32
    %c0_i32_21 = arith.constant 0 : i32
    %40 = arith.cmpi ne, %39, %c0_i32_21 : i32
    scf.if %40 {
      %c0_22 = arith.constant 0 : index
      %c0_23 = arith.constant 0 : index
      %41 = vector.load %arg8[%c0_22, %c0_23] : memref<128x1xf32, #tpu.memory_space<vmem>>, vector<128x1xf32>
      %42 = tpu.reciprocal %41 {approx = true} : vector<128x1xf32> -> vector<128x1xf32>
      %43 = arith.mulf %41, %42 : vector<128x1xf32>
      %cst_24 = arith.constant 2.000000e+00 : f32
      %44 = vector.broadcast %cst_24 : f32 to vector<128x1xf32>
      %45 = arith.subf %44, %43 : vector<128x1xf32>
      %46 = arith.mulf %42, %45 : vector<128x1xf32>
      %c0_25 = arith.constant 0 : index
      %c0_26 = arith.constant 0 : index
      %47 = vector.load %arg9[%c0_25, %c0_26] : memref<128x128xf32, #tpu.memory_space<vmem>>, vector<128x128xf32>
      %48 = vector.broadcast %46 : vector<128x1xf32> to vector<128x128xf32>
      %49 = arith.mulf %47, %48 : vector<128x128xf32>
      %c0_27 = arith.constant 0 : index
      %c0_28 = arith.constant 0 : index
      %50 = vector.load %arg5[%c0_27, %c0_28] : memref<128x128xf32, #tpu.memory_space<vmem>>, vector<128x128xf32>
      tpu.vector_store %arg5[%c0_27, %c0_28], %49 {strides = array<i32>} : memref<128x128xf32, #tpu.memory_space<vmem>>, vector<128x128xf32>,
    } else {
    }
    return
  }
  func.func @transform_0(%arg0: i32, %arg1: i32) -> (i32, i32) {
    %c0_i32 = arith.constant 0 : i32
    %c0_i32_0 = arith.constant 0 : i32
    return %arg0, %c0_i32 : i32, i32
  }
  func.func @transform_1(%arg0: i32, %arg1: i32) -> (i32, i32) {
    %c0_i32 = arith.constant 0 : i32
    %c0_i32_0 = arith.constant 0 : i32
    return %arg1, %c0_i32 : i32, i32
  }
  func.func @transform_2(%arg0: i32, %arg1: i32) -> (i32, i32) {
    %c0_i32 = arith.constant 0 : i32
    %c0_i32_0 = arith.constant 0 : i32
    %c0_i32_1 = arith.constant 0 : i32
    return %c0_i32, %c0_i32_0 : i32, i32
  }
  func.func @transform_3(%arg0: i32, %arg1: i32) -> (i32, i32) {
    %c0_i32 = arith.constant 0 : i32
    %c0_i32_0 = arith.constant 0 : i32
    return %arg0, %c0_i32 : i32, i32
  }
}

module attributes {stable_mosaic.version = 11 : i64} {
  func.func @_kv_proj_kernel(%arg0: i32, %arg1: memref<128x128xf32, #tpu.memory_space<vmem>>, %arg2: memref<128x256xf32, #tpu.memory_space<vmem>>, %arg3: memref<128x256xf32, #tpu.memory_space<vmem>>) attributes {dimension_semantics = [#tpu.dimension_semantics<parallel>], iteration_bounds = array<i64: 1>, scalar_prefetch = 0 : i64, scratch_operands = 0 : i64, tpu.core_type = #tpu.core_type<tc>, window_params = [{transform_indices = @transform_0, window_bounds = array<i64: 128, 128>}, {pipeline_mode = #tpu.pipeline_mode<synchronous>, transform_indices = @transform_1, window_bounds = array<i64: 128, 256>}, {transform_indices = @transform_2, window_bounds = array<i64: 128, 256>}]} {
    %c0 = arith.constant 0 : index
    %c0_0 = arith.constant 0 : index
    %0 = vector.load %arg1[%c0, %c0_0] : memref<128x128xf32, #tpu.memory_space<vmem>>, vector<128x128xf32>
    %c0_1 = arith.constant 0 : index
    %c0_2 = arith.constant 0 : index
    %1 = vector.load %arg2[%c0_1, %c0_2] : memref<128x256xf32, #tpu.memory_space<vmem>>, vector<128x256xf32>
    %cst = arith.constant dense<0.000000e+00> : vector<128x256xf32>
    %2 = tpu.matmul %0, %1, %cst {dimension_numbers = #tpu.dot_dimension_numbers<[1], [0], [0], [1], [0, 0, 1, 1], [], []>} : vector<128x128xf32>, vector<128x256xf32>, vector<128x256xf32> -> vector<128x256xf32>
    %c0_3 = arith.constant 0 : index
    %c0_4 = arith.constant 0 : index
    %3 = vector.load %arg3[%c0_3, %c0_4] : memref<128x256xf32, #tpu.memory_space<vmem>>, vector<128x256xf32>
    tpu.vector_store %arg3[%c0_3, %c0_4], %2 {strides = array<i32>} : memref<128x256xf32, #tpu.memory_space<vmem>>, vector<128x256xf32>,
    return
  }
  func.func @transform_0(%arg0: i32) -> (i32, i32) {
    %c0_i32 = arith.constant 0 : i32
    %c0_i32_0 = arith.constant 0 : i32
    return %arg0, %c0_i32 : i32, i32
  }
  func.func @transform_1(%arg0: i32) -> (i32, i32) {
    %c0_i32 = arith.constant 0 : i32
    %c0_i32_0 = arith.constant 0 : i32
    %c0_i32_1 = arith.constant 0 : i32
    return %c0_i32, %c0_i32_0 : i32, i32
  }
  func.func @transform_2(%arg0: i32) -> (i32, i32) {
    %c0_i32 = arith.constant 0 : i32
    %c0_i32_0 = arith.constant 0 : i32
    return %arg0, %c0_i32 : i32, i32
  }
}

</mosaic_0001>

<bundles_post_ra>
// kernel: self_attention_v1.2
= control target key start
LH: loop header
LB: loop body
LE: loop exit
PB: predicated region body
PF: predicated region fallthrough
CT: control target
= control target key end

     0   :  { %v305_v3 = vmov 0.0   ;;  %s577_s1 = inlined_call_operand.vmem [shape: f32[128,256], index: 1, kind: input, shape index: {}]   ;;  %s578_s0 = inlined_call_operand.vmem [shape: f32[128,128], index: 0, kind: input, shape index: {}]   ;;  %s579_s2 = inlined_call_operand.vmem [shape: f32[128,256], index: 2, kind: output, shape index: {}]  }
   0x1   :  { %v28_v0 = vld [vmem:[%s577_s1 + $0x8] sm:$0xff]  ;;  %v30_v1 = vld [vmem:[%s577_s1 + $0x18] sm:$0xff]  ;;  %v27_v2 = vld [vmem:[%s577_s1] sm:$0xff]  ;;  %123 = vmatprep.mubr.f32.mxu0 %v305_v3  ;;  %171 = vmatprep.mubr.f32.mxu1 %v305_v3 }
   0x2   :  { %v256_v4 = vpack.c.bf16 %v30_v1, %v28_v0  ;;  %v29_v5 = vld [vmem:[%s577_s1 + $0x10] sm:$0xff]  ;;  %v32_v6 = vld [vmem:[%s577_s1 + $0x28] sm:$0xff]  ;;  %v34_v7 = vld [vmem:[%s577_s1 + $0x38] sm:$0xff] }
   0x3   :  { %v258_v8 = vpack.c.bf16 %v29_v5, %v27_v2  ;;  %v260_v9 = vpack.c.bf16 %v34_v7, %v32_v6  ;;  %v31_v10 = vld [vmem:[%s577_s1 + $0x20] sm:$0xff]  ;;  %v33_v11 = vld [vmem:[%s577_s1 + $0x30] sm:$0xff]  ;;  %v36_v12 = vld [vmem:[%s577_s1 + $0x48] sm:$0xff] }
   0x4   :  { %257 = vmatprep.subr.bf16.mxu0 %v256_v4  ;;  %288 = vmatprep.subr.bf16.mxu1 %v256_v4  ;;  %v38_v13 = vld [vmem:[%s577_s1 + $0x58] sm:$0xff]  ;;  %v262_v14 = vpack.c.bf16 %v33_v11, %v31_v10  ;;  %v35_v16 = vld [vmem:[%s577_s1 + $0x40] sm:$0xff]  ;;  %v37_v17 = vld [vmem:[%s577_s1 + $0x50] sm:$0xff] }
   0x5   :  { %259 = vmatpush1.bf16.msra.mxu0 %v258_v8  ;;  %296 = vmatpush1.bf16.msra.mxu1 %v258_v8  ;;  %v264_v15 = vpack.c.bf16 %v38_v13, %v36_v12  ;;  %v40_v18 = vld [vmem:[%s577_s1 + $0x68] sm:$0xff]  ;;  %v42_v19 = vld [vmem:[%s577_s1 + $0x78] sm:$0xff]  ;;  %v266_v20 = vpack.c.bf16 %v37_v17, %v35_v16  ;;  %v39_v22 = vld [vmem:[%s577_s1 + $0x60] sm:$0xff] }
   0x6   :  { %261 = vmatprep.subr.bf16.mxu0 %v260_v9  ;;  %289 = vmatprep.subr.bf16.mxu1 %v260_v9  ;;  %v268_v21 = vpack.c.bf16 %v42_v19, %v40_v18  ;;  %v41_v23 = vld [vmem:[%s577_s1 + $0x70] sm:$0xff]  ;;  %v44_v24 = vld [vmem:[%s577_s1 + $0x88] sm:$0xff]  ;;  %v46_v25 = vld [vmem:[%s577_s1 + $0x98] sm:$0xff] }
   0x7   :  { %v270_v26 = vpack.c.bf16 %v41_v23, %v39_v22  ;;  %v272_v27 = vpack.c.bf16 %v46_v25, %v44_v24  ;;  %v43_v28 = vld [vmem:[%s577_s1 + $0x80] sm:$0xff]  ;;  %v45_v29 = vld [vmem:[%s577_s1 + $0x90] sm:$0xff]  ;;  %v48_v30 = vld [vmem:[%s577_s1 + $0xa8] sm:$0xff] }
   0x8   :  { %v50_v31 = vld [vmem:[%s577_s1 + $0xb8] sm:$0xff]  ;;  %v274_v32 = vpack.c.bf16 %v45_v29, %v43_v28  ;;  %v47_v34 = vld [vmem:[%s577_s1 + $0xa0] sm:$0xff]  ;;  %v49_v35 = vld [vmem:[%s577_s1 + $0xb0] sm:$0xff] }
   0x9   :  { %263 = vmatpush1.bf16.msra.mxu0 %v262_v14  ;;  %297 = vmatpush1.bf16.msra.mxu1 %v262_v14  ;;  %v276_v33 = vpack.c.bf16 %v50_v31, %v48_v30  ;;  %v52_v36 = vld [vmem:[%s577_s1 + $0xc8] sm:$0xff]  ;;  %v54_v37 = vld [vmem:[%s577_s1 + $0xd8] sm:$0xff]  ;;  %v278_v38 = vpack.c.bf16 %v49_v35, %v47_v34  ;;  %v51_v40 = vld [vmem:[%s577_s1 + $0xc0] sm:$0xff] }
   0xa   :  { %265 = vmatprep.subr.bf16.mxu0 %v264_v15  ;;  %290 = vmatprep.subr.bf16.mxu1 %v264_v15  ;;  %v280_v39 = vpack.c.bf16 %v54_v37, %v52_v36  ;;  %v53_v41 = vld [vmem:[%s577_s1 + $0xd0] sm:$0xff]  ;;  %v56_v42 = vld [vmem:[%s577_s1 + $0xe8] sm:$0xff]  ;;  %v58_v43 = vld [vmem:[%s577_s1 + $0xf8] sm:$0xff] }
   0xb   :  { %v282_v44 = vpack.c.bf16 %v53_v41, %v51_v40  ;;  %v284_v45 = vpack.c.bf16 %v58_v43, %v56_v42  ;;  %v55_v46 = vld [vmem:[%s577_s1 + $0xe0] sm:$0xff]  ;;  %v57_v47 = vld [vmem:[%s577_s1 + $0xf0] sm:$0xff]  ;;  %v12_v51 = vld [vmem:[%s578_s0 + $0x8] sm:$0xff] }
   0xc   :  { %v286_v48 = vpack.c.bf16 %v57_v47, %v55_v46  ;;  %v11_v49 = vld [vmem:[%s578_s0] sm:$0xff]  ;;  %v20_v52 = vld [vmem:[%s578_s0 + $0x48] sm:$0xff]  ;;  %v13_v53 = vld [vmem:[%s578_s0 + $0x10] sm:$0xff] }
   0xd   :  { %267 = vmatpush1.bf16.msra.mxu0 %v266_v20  ;;  %298 = vmatpush1.bf16.msra.mxu1 %v266_v20  ;;  %v19_v50 = vld [vmem:[%s578_s0 + $0x40] sm:$0xff]  ;;  %v21_v54 = vld [vmem:[%s578_s0 + $0x50] sm:$0xff]  ;;  %v14_v55 = vld [vmem:[%s578_s0 + $0x18] sm:$0xff] }
   0xe   :  { %269 = vmatprep.subr.bf16.mxu0 %v268_v21  ;;  %291 = vmatprep.subr.bf16.mxu1 %v268_v21  ;;  %v22_v56 = vld [vmem:[%s578_s0 + $0x58] sm:$0xff]  ;;  %v15_v57 = vld [vmem:[%s578_s0 + $0x20] sm:$0xff]  ;;  %v16_v59 = vld [vmem:[%s578_s0 + $0x28] sm:$0xff] }
   0xf   :  { %v23_v58 = vld [vmem:[%s578_s0 + $0x60] sm:$0xff]  ;;  %v24_v60 = vld [vmem:[%s578_s0 + $0x68] sm:$0xff]  ;;  %v17_v61 = vld [vmem:[%s578_s0 + $0x30] sm:$0xff] }
  0x10   :  { %v25_v62 = vld [vmem:[%s578_s0 + $0x70] sm:$0xff]  ;;  %v18_v63 = vld [vmem:[%s578_s0 + $0x38] sm:$0xff] }
  0x11   :  { %271 = vmatpush1.bf16.msra.mxu0 %v270_v26  ;;  %299 = vmatpush1.bf16.msra.mxu1 %v270_v26  ;;  %v26_v0 = vld [vmem:[%s578_s0 + $0x78] sm:$0xff] }
  0x12   :  { %273 = vmatprep.subr.bf16.mxu0 %v272_v27  ;;  %292 = vmatprep.subr.bf16.mxu1 %v272_v27 }
  0x15   :  { %275 = vmatpush1.bf16.msra.mxu0 %v274_v32  ;;  %300 = vmatpush1.bf16.msra.mxu1 %v274_v32 }
  0x16   :  { %277 = vmatprep.subr.bf16.mxu0 %v276_v33  ;;  %293 = vmatprep.subr.bf16.mxu1 %v276_v33 }
  0x19   :  { %279 = vmatpush1.bf16.msra.mxu0 %v278_v38  ;;  %301 = vmatpush1.bf16.msra.mxu1 %v278_v38 }
  0x1a   :  { %281 = vmatprep.subr.bf16.mxu0 %v280_v39  ;;  %294 = vmatprep.subr.bf16.mxu1 %v280_v39 }
  0x1d   :  { %283 = vmatpush1.bf16.msra.mxu0 %v282_v44  ;;  %302 = vmatpush1.bf16.msra.mxu1 %v282_v44 }
  0x1e   :  { %285 = vmatprep.subr.bf16.mxu0 %v284_v45  ;;  %295 = vmatprep.subr.bf16.mxu1 %v284_v45 }
  0x21   :  { %287 = vmatpush1.bf16.msra.mxu0 %v286_v48  ;;  %303 = vmatpush1.bf16.msra.mxu1 %v286_v48 }
  0x24   :  { %124 = vmatmul.mubr.f32.vlgmr.msra.gmra.mrb[0].mxu0 %v11_v49  ;;  %172 = vmatmul.mubr.f32.vlgmr.msra.gmra.mrb[0].mxu1 %v19_v50 }
  0x25   :  { %129 = vmatprep.mubr.f32.mxu0 %v305_v3  ;;  %177 = vmatprep.mubr.f32.mxu1 %v305_v3 }
  0x28   :  { %130 = vmatmul.mubr.f32.gmra.mrb[2].mxu0 %v12_v51  ;;  %178 = vmatmul.mubr.f32.gmra.mrb[2].mxu1 %v20_v52 }
  0x29   :  { %135 = vmatprep.mubr.f32.mxu0 %v305_v3  ;;  %183 = vmatprep.mubr.f32.mxu1 %v305_v3 }
  0x2c   :  { %136 = vmatmul.mubr.f32.gmra.mrb[4].mxu0 %v13_v53  ;;  %184 = vmatmul.mubr.f32.gmra.mrb[4].mxu1 %v21_v54 }
  0x2d   :  { %141 = vmatprep.mubr.f32.mxu0 %v305_v3  ;;  %189 = vmatprep.mubr.f32.mxu1 %v305_v3 }
  0x30   :  { %142 = vmatmul.mubr.f32.gmra.mrb[6].mxu0 %v14_v55  ;;  %190 = vmatmul.mubr.f32.gmra.mrb[6].mxu1 %v22_v56 }
  0x31   :  { %147 = vmatprep.mubr.f32.mxu0 %v305_v3  ;;  %195 = vmatprep.mubr.f32.mxu1 %v305_v3 }
  0x34   :  { %148 = vmatmul.mubr.f32.gmra.mrb[8].mxu0 %v15_v57  ;;  %196 = vmatmul.mubr.f32.gmra.mrb[8].mxu1 %v23_v58 }
  0x35   :  { %153 = vmatprep.mubr.f32.mxu0 %v305_v3  ;;  %201 = vmatprep.mubr.f32.mxu1 %v305_v3 }
  0x38   :  { %154 = vmatmul.mubr.f32.gmra.mrb[10].mxu0 %v16_v59  ;;  %202 = vmatmul.mubr.f32.gmra.mrb[10].mxu1 %v24_v60 }
  0x39   :  { %159 = vmatprep.mubr.f32.mxu0 %v305_v3  ;;  %207 = vmatprep.mubr.f32.mxu1 %v305_v3 }
  0x3c   :  { %160 = vmatmul.mubr.f32.gmra.mrb[12].mxu0 %v17_v61  ;;  %208 = vmatmul.mubr.f32.gmra.mrb[12].mxu1 %v25_v62 }
  0x3d   :  { %165 = vmatprep.mubr.f32.mxu0 %v305_v3  ;;  %213 = vmatprep.mubr.f32.mxu1 %v305_v3 }
  0x40   :  { %166 = vmatmul.mubr.f32.gmra.mrb[14].mxu0 %v18_v63  ;;  %214 = vmatmul.mubr.f32.gmra.mrb[14].mxu1 %v26_v0 }
  0xf7   :  { %v125_v1 = vpop.f32.mrb[0].mxu0  ;;  %v173_v2 = vpop.f32.mrb[0].mxu1 }
  0xf8   :  { %220 = vst [vmem:[%s579_s2] sm:$0xff] %v125_v1  ;;  %236 = vst [vmem:[%s579_s2 + $0x80] sm:$0xff] %v173_v2  ;;  %v127_v3 = vpop.f32.mrb[1].mxu0  ;;  %v175_v4 = vpop.f32.mrb[1].mxu1 }
  0xf9   :  { %221 = vst [vmem:[%s579_s2 + $0x8] sm:$0xff] %v127_v3  ;;  %237 = vst [vmem:[%s579_s2 + $0x88] sm:$0xff] %v175_v4 }
  0xfb   :  { %v131_v5 = vpop.f32.mrb[2].mxu0  ;;  %v179_v6 = vpop.f32.mrb[2].mxu1 }
  0xfc   :  { %222 = vst [vmem:[%s579_s2 + $0x10] sm:$0xff] %v131_v5  ;;  %238 = vst [vmem:[%s579_s2 + $0x90] sm:$0xff] %v179_v6  ;;  %v133_v7 = vpop.f32.mrb[3].mxu0  ;;  %v181_v8 = vpop.f32.mrb[3].mxu1 }
  0xfd   :  { %223 = vst [vmem:[%s579_s2 + $0x18] sm:$0xff] %v133_v7  ;;  %239 = vst [vmem:[%s579_s2 + $0x98] sm:$0xff] %v181_v8 }
  0xff   :  { %v137_v9 = vpop.f32.mrb[4].mxu0  ;;  %v185_v10 = vpop.f32.mrb[4].mxu1 }
 0x100   :  { %224 = vst [vmem:[%s579_s2 + $0x20] sm:$0xff] %v137_v9  ;;  %240 = vst [vmem:[%s579_s2 + $0xa0] sm:$0xff] %v185_v10  ;;  %v139_v11 = vpop.f32.mrb[5].mxu0  ;;  %v187_v12 = vpop.f32.mrb[5].mxu1 }
 0x101   :  { %225 = vst [vmem:[%s579_s2 + $0x28] sm:$0xff] %v139_v11  ;;  %241 = vst [vmem:[%s579_s2 + $0xa8] sm:$0xff] %v187_v12 }
 0x103   :  { %v143_v13 = vpop.f32.mrb[6].mxu0  ;;  %v191_v14 = vpop.f32.mrb[6].mxu1 }
 0x104   :  { %226 = vst [vmem:[%s579_s2 + $0x30] sm:$0xff] %v143_v13  ;;  %242 = vst [vmem:[%s579_s2 + $0xb0] sm:$0xff] %v191_v14  ;;  %v145_v15 = vpop.f32.mrb[7].mxu0  ;;  %v193_v16 = vpop.f32.mrb[7].mxu1 }
 0x105   :  { %227 = vst [vmem:[%s579_s2 + $0x38] sm:$0xff] %v145_v15  ;;  %243 = vst [vmem:[%s579_s2 + $0xb8] sm:$0xff] %v193_v16 }
 0x107   :  { %v149_v17 = vpop.f32.mrb[8].mxu0  ;;  %v197_v18 = vpop.f32.mrb[8].mxu1 }
 0x108   :  { %228 = vst [vmem:[%s579_s2 + $0x40] sm:$0xff] %v149_v17  ;;  %244 = vst [vmem:[%s579_s2 + $0xc0] sm:$0xff] %v197_v18  ;;  %v151_v19 = vpop.f32.mrb[9].mxu0  ;;  %v199_v20 = vpop.f32.mrb[9].mxu1 }
 0x109   :  { %229 = vst [vmem:[%s579_s2 + $0x48] sm:$0xff] %v151_v19  ;;  %245 = vst [vmem:[%s579_s2 + $0xc8] sm:$0xff] %v199_v20 }
 0x10b   :  { %v155_v21 = vpop.f32.mrb[10].mxu0  ;;  %v203_v22 = vpop.f32.mrb[10].mxu1 }
 0x10c   :  { %230 = vst [vmem:[%s579_s2 + $0x50] sm:$0xff] %v155_v21  ;;  %246 = vst [vmem:[%s579_s2 + $0xd0] sm:$0xff] %v203_v22  ;;  %v157_v23 = vpop.f32.mrb[11].mxu0  ;;  %v205_v24 = vpop.f32.mrb[11].mxu1 }
 0x10d   :  { %231 = vst [vmem:[%s579_s2 + $0x58] sm:$0xff] %v157_v23  ;;  %247 = vst [vmem:[%s579_s2 + $0xd8] sm:$0xff] %v205_v24 }
 0x10f   :  { %v161_v25 = vpop.f32.mrb[12].mxu0  ;;  %v209_v26 = vpop.f32.mrb[12].mxu1 }
 0x110   :  { %232 = vst [vmem:[%s579_s2 + $0x60] sm:$0xff] %v161_v25  ;;  %248 = vst [vmem:[%s579_s2 + $0xe0] sm:$0xff] %v209_v26  ;;  %v163_v27 = vpop.f32.mrb[13].mxu0  ;;  %v211_v28 = vpop.f32.mrb[13].mxu1 }
 0x111   :  { %233 = vst [vmem:[%s579_s2 + $0x68] sm:$0xff] %v163_v27  ;;  %249 = vst [vmem:[%s579_s2 + $0xe8] sm:$0xff] %v211_v28 }
 0x113   :  { %v167_v29 = vpop.f32.mrb[14].mxu0  ;;  %v215_v30 = vpop.f32.mrb[14].mxu1 }
 0x114   :  { %234 = vst [vmem:[%s579_s2 + $0x70] sm:$0xff] %v167_v29  ;;  %250 = vst [vmem:[%s579_s2 + $0xf0] sm:$0xff] %v215_v30  ;;  %v169_v31 = vpop.f32.mrb[15].mxu0  ;;  %v217_v32 = vpop.f32.mrb[15].mxu1 }
 0x115   :  { %235 = vst [vmem:[%s579_s2 + $0x78] sm:$0xff] %v169_v31  ;;  %251 = vst [vmem:[%s579_s2 + $0xf8] sm:$0xff] %v217_v32 }

// kernel: self_attention_v1.3
= control target key start
LH: loop header
LB: loop body
LE: loop exit
PB: predicated region body
PF: predicated region fallthrough
CT: control target
= control target key end

     0   :  { %vm227_vm0 = vcmask 7168   ;;  %s2501_s2 = inlined_call_operand.vmem [shape: f32[128,128], index: 2, kind: input, shape index: {}]   ;;  %s2502_s0 = inlined_call_operand.vmem [shape: f32[128,128], index: 0, kind: input, shape index: {}]   ;;  %s2503_s1 = inlined_call_operand.vmem [shape: f32[128,256], index: 1, kind: input, shape index: {}]   ;;  %s2504_s3 = inlined_call_operand.vmem [shape: f32[128,128], index: 3, kind: output, shape index: {}]  }
   0x1   :  { %v34_v0 = vld [vmem:[%s2501_s2] sm:$0xff]  ;;  %v35_v1 = vld [vmem:[%s2501_s2 + $0x8] sm:$0xff]  ;;  %v36_v2 = vld [vmem:[%s2501_s2 + $0x10] sm:$0xff] }
   0x2   :  { %v1612_v3 = vpack.c.bf16 %v35_v1, %v34_v0  ;;  %v37_v4 = vld [vmem:[%s2501_s2 + $0x18] sm:$0xff]  ;;  %v38_v6 = vld [vmem:[%s2501_s2 + $0x20] sm:$0xff]  ;;  %v39_v7 = vld [vmem:[%s2501_s2 + $0x28] sm:$0xff] }
   0x3   :  { %v1616_v5 = vpack.c.bf16 %v37_v4, %v36_v2  ;;  %v1620_v8 = vpack.c.bf16 %v39_v7, %v38_v6  ;;  %v18_v9 = vld [vmem:[%s2502_s0] sm:$0xff]  ;;  %v40_v10 = vld [vmem:[%s2501_s2 + $0x30] sm:$0xff]  ;;  %v41_v11 = vld [vmem:[%s2501_s2 + $0x38] sm:$0xff] }
   0x4   :  { %1613 = vmatprep.subr.bf16.mxu0 %v1612_v3  ;;  %1476 = vmatprep.mubr.f32.mxu0 %v18_v9  ;;  %v1624_v12 = vpack.c.bf16 %v41_v11, %v40_v10  ;;  %v42_v13 = vld [vmem:[%s2501_s2 + $0x40] sm:$0xff]  ;;  %v43_v14 = vld [vmem:[%s2501_s2 + $0x48] sm:$0xff]  ;;  %v278_v16 = vld [vmem:[%s2503_s1 + $0x10] sm:$0xff] }
   0x5   :  { %1615 = vmatpush3.bf16.msra.mxu0 %v1612_v3  ;;  %v276_v15 = vld [vmem:[%s2503_s1] sm:$0xff]  ;;  %v282_v18 = vld [vmem:[%s2503_s1 + $0x30] sm:$0xff]  ;;  %v1628_v21 = vpack.c.bf16 %v43_v14, %v42_v13  ;;  %v45_v23 = vld [vmem:[%s2501_s2 + $0x58] sm:$0xff] }
   0x6   :  { %1617 = vmatprep.subr.bf16.mxu0 %v1616_v5  ;;  %v280_v17 = vld [vmem:[%s2503_s1 + $0x20] sm:$0xff]  ;;  %v1644_v19 = vpack.c.bf16 %v278_v16, %v276_v15  ;;  %v44_v22 = vld [vmem:[%s2501_s2 + $0x50] sm:$0xff]  ;;  %v47_v28 = vld [vmem:[%s2501_s2 + $0x68] sm:$0xff] }
   0x7   :  { %v1648_v20 = vpack.c.bf16 %v282_v18, %v280_v17  ;;  %v1632_v24 = vpack.c.bf16 %v45_v23, %v44_v22  ;;  %v284_v25 = vld [vmem:[%s2503_s1 + $0x40] sm:$0xff]  ;;  %v286_v26 = vld [vmem:[%s2503_s1 + $0x50] sm:$0xff]  ;;  %v49_v32 = vld [vmem:[%s2501_s2 + $0x78] sm:$0xff] }
   0x8   :  { %1645 = vmatprep.subr.bf16.mxu1 %v1644_v19  ;;  %v46_v27 = vld [vmem:[%s2501_s2 + $0x60] sm:$0xff]  ;;  %v1652_v29 = vpack.c.bf16 %v286_v26, %v284_v25  ;;  %v48_v31 = vld [vmem:[%s2501_s2 + $0x70] sm:$0xff]  ;;  %v19_v37 = vld [vmem:[%s2502_s0 + $0x8] sm:$0xff] }
   0x9   :  { %1619 = vmatpush3.bf16.msra.mxu0 %v1616_v5  ;;  %1647 = vmatpush3.bf16.xpose.msra.mxu1 %v1644_v19  ;;  %v1636_v30 = vpack.c.bf16 %v47_v28, %v46_v27  ;;  %v1640_v33 = vpack.c.bf16 %v49_v32, %v48_v31  ;;  %v288_v34 = vld [vmem:[%s2503_s1 + $0x60] sm:$0xff]  ;;  %v290_v35 = vld [vmem:[%s2503_s1 + $0x70] sm:$0xff]  ;;  %v21_v41 = vld [vmem:[%s2502_s0 + $0x18] sm:$0xff]  ;;  %v1809_v32 = vmov -inf  }
   0xa   :  { %1621 = vmatprep.subr.bf16.mxu0 %v1620_v8  ;;  %1649 = vmatprep.subr.bf16.mxu1 %v1648_v20  ;;  %v1656_v36 = vpack.c.bf16 %v290_v35, %v288_v34  ;;  %v20_v38 = vld [vmem:[%s2502_s0 + $0x10] sm:$0xff]  ;;  %v292_v39 = vld [vmem:[%s2503_s1 + $0x80] sm:$0xff]  ;;  %v23_v44 = vld [vmem:[%s2502_s0 + $0x28] sm:$0xff]  ;;  %228 = vst.msk [vmem:[#allocation3] sm:$0xff] %vm227_vm0, %v1809_v32 }
   0xb   :  { %v294_v40 = vld [vmem:[%s2503_s1 + $0x90] sm:$0xff]  ;;  %v22_v43 = vld [vmem:[%s2502_s0 + $0x20] sm:$0xff]  ;;  %v25_v48 = vld [vmem:[%s2502_s0 + $0x38] sm:$0xff]  ;;  %229 = vst.msk [vmem:[#allocation3 + $0x8] sm:$0xff] %vm227_vm0, %v1809_v32 }
   0xc   :  { %v1660_v42 = vpack.c.bf16 %v294_v40, %v292_v39  ;;  %v24_v45 = vld [vmem:[%s2502_s0 + $0x30] sm:$0xff]  ;;  %v296_v46 = vld [vmem:[%s2503_s1 + $0xa0] sm:$0xff]  ;;  %v27_v51 = vld [vmem:[%s2502_s0 + $0x48] sm:$0xff]  ;;  %230 = vst.msk [vmem:[#allocation3 + $0x10] sm:$0xff] %vm227_vm0, %v1809_v32 }
   0xd   :  { %1623 = vmatpush3.bf16.msra.mxu0 %v1620_v8  ;;  %v298_v47 = vld [vmem:[%s2503_s1 + $0xb0] sm:$0xff]  ;;  %v26_v50 = vld [vmem:[%s2502_s0 + $0x40] sm:$0xff]  ;;  %v29_v55 = vld [vmem:[%s2502_s0 + $0x58] sm:$0xff]  ;;  %231 = vst.msk [vmem:[#allocation3 + $0x18] sm:$0xff] %vm227_vm0, %v1809_v32 }
   0xe   :  { %1625 = vmatprep.subr.bf16.mxu0 %v1624_v12  ;;  %v1664_v49 = vpack.c.bf16 %v298_v47, %v296_v46  ;;  %v28_v52 = vld [vmem:[%s2502_s0 + $0x50] sm:$0xff]  ;;  %v300_v53 = vld [vmem:[%s2503_s1 + $0xc0] sm:$0xff]  ;;  %v31_v58 = vld [vmem:[%s2502_s0 + $0x68] sm:$0xff]  ;;  %232 = vst.msk [vmem:[#allocation3 + $0x20] sm:$0xff] %vm227_vm0, %v1809_v32 }
   0xf   :  { %v302_v54 = vld [vmem:[%s2503_s1 + $0xd0] sm:$0xff]  ;;  %v30_v57 = vld [vmem:[%s2502_s0 + $0x60] sm:$0xff]  ;;  %v33_v62 = vld [vmem:[%s2502_s0 + $0x78] sm:$0xff]  ;;  %233 = vst.msk [vmem:[#allocation3 + $0x28] sm:$0xff] %vm227_vm0, %v1809_v32 }
  0x10   :  { %v1668_v56 = vpack.c.bf16 %v302_v54, %v300_v53  ;;  %v32_v59 = vld [vmem:[%s2502_s0 + $0x70] sm:$0xff]  ;;  %v304_v60 = vld [vmem:[%s2503_s1 + $0xe0] sm:$0xff]  ;;  %234 = vst.msk [vmem:[#allocation3 + $0x30] sm:$0xff] %vm227_vm0, %v1809_v32  ;;  %235 = vst.msk [vmem:[#allocation3 + $0x38] sm:$0xff] %vm227_vm0, %v1809_v32  ;;  %v1810_v54 = vmov 0  }
  0x11   :  { %1627 = vmatpush3.bf16.msra.mxu0 %v1624_v12  ;;  %1651 = vmatpush3.bf16.xpose.msra.mxu1 %v1648_v20  ;;  %v306_v61 = vld [vmem:[%s2503_s1 + $0xf0] sm:$0xff]  ;;  %236 = vst.msk [vmem:[#allocation3 + $0x40] sm:$0xff] %vm227_vm0, %v1809_v32  ;;  %237 = vst.msk [vmem:[#allocation3 + $0x48] sm:$0xff] %vm227_vm0, %v1809_v32 }
  0x12   :  { %1629 = vmatprep.subr.bf16.mxu0 %v1628_v21  ;;  %1653 = vmatprep.subr.bf16.mxu1 %v1652_v29  ;;  %v1672_v63 = vpack.c.bf16 %v306_v61, %v304_v60  ;;  %238 = vst.msk [vmem:[#allocation3 + $0x50] sm:$0xff] %vm227_vm0, %v1809_v32  ;;  %239 = vst.msk [vmem:[#allocation3 + $0x58] sm:$0xff] %vm227_vm0, %v1809_v32 }
  0x13   :  { %240 = vst.msk [vmem:[#allocation3 + $0x60] sm:$0xff] %vm227_vm0, %v1809_v32  ;;  %241 = vst.msk [vmem:[#allocation3 + $0x68] sm:$0xff] %vm227_vm0, %v1809_v32  ;;  %1711 = vset.pattern.permute.xlu0 %v1810_v54  ;;  %1712 = vset.pattern.permute.xlu1 %v1810_v54 }
  0x14   :  { %242 = vst.msk [vmem:[#allocation3 + $0x70] sm:$0xff] %vm227_vm0, %v1809_v32  ;;  %243 = vst.msk [vmem:[#allocation3 + $0x78] sm:$0xff] %vm227_vm0, %v1809_v32 }
  0x15   :  { %1631 = vmatpush3.bf16.msra.mxu0 %v1628_v21  ;;  %v2147_v32 = vld [vmem:[#allocation3 + $0x20] sm:$0xff] }
  0x16   :  { %1633 = vmatprep.subr.bf16.mxu0 %v1632_v24 }
  0x19   :  { %1635 = vmatpush3.bf16.msra.mxu0 %v1632_v24  ;;  %1655 = vmatpush3.bf16.xpose.msra.mxu1 %v1652_v29 }
  0x1a   :  { %1637 = vmatprep.subr.bf16.mxu0 %v1636_v30  ;;  %1657 = vmatprep.subr.bf16.mxu1 %v1656_v36 }
  0x1d   :  { %1639 = vmatpush3.bf16.msra.mxu0 %v1636_v30 }
  0x1e   :  { %1641 = vmatprep.subr.bf16.mxu0 %v1640_v33 }
  0x21   :  { %1643 = vmatpush3.bf16.msra.mxu0 %v1640_v33  ;;  %1659 = vmatpush3.bf16.xpose.msra.mxu1 %v1656_v36  ;;  %v470_v33 = vlaneseq }
  0x22   :  { %1661 = vmatprep.subr.bf16.mxu1 %v1660_v42 }
  0x23   :  { %v1992_v34 = vand.u32 127, %v470_v33 }
  0x24   :  { %1477 = vmatmul.mubr.f32.vlgmr.msra.gmra.mrb[0].mxu0 %v19_v37 }
  0x25   :  { %1479 = vmatprep.mubr.f32.mxu0 %v20_v38  ;;  %vm474_vm1 = vcmp.lt.s32.totalorder %v1992_v34, 6 }
  0x28   :  { %1480 = vmatmul.mubr.f32.gmra.mrb[2].mxu0 %v21_v41 }
  0x29   :  { %1482 = vmatprep.mubr.f32.mxu0 %v22_v43  ;;  %1663 = vmatpush3.bf16.xpose.msra.mxu1 %v1660_v42 }
  0x2a   :  { %1665 = vmatprep.subr.bf16.mxu1 %v1664_v49 }
  0x2c   :  { %1483 = vmatmul.mubr.f32.gmra.mrb[4].mxu0 %v23_v44 }
  0x2d   :  { %1485 = vmatprep.mubr.f32.mxu0 %v24_v45 }
  0x30   :  { %1486 = vmatmul.mubr.f32.gmra.mrb[6].mxu0 %v25_v48 }
  0x31   :  { %1488 = vmatprep.mubr.f32.mxu0 %v26_v50  ;;  %1667 = vmatpush3.bf16.xpose.msra.mxu1 %v1664_v49 }
  0x32   :  { %1669 = vmatprep.subr.bf16.mxu1 %v1668_v56 }
  0x34   :  { %1489 = vmatmul.mubr.f32.gmra.mrb[8].mxu0 %v27_v51 }
  0x35   :  { %1491 = vmatprep.mubr.f32.mxu0 %v28_v52 }
  0x38   :  { %1492 = vmatmul.mubr.f32.gmra.mrb[10].mxu0 %v29_v55 }
  0x39   :  { %1494 = vmatprep.mubr.f32.mxu0 %v30_v57  ;;  %1671 = vmatpush3.bf16.xpose.msra.mxu1 %v1668_v56 }
  0x3a   :  { %1673 = vmatprep.subr.bf16.mxu1 %v1672_v63 }
  0x3c   :  { %1495 = vmatmul.mubr.f32.gmra.mrb[12].mxu0 %v31_v58 }
  0x3d   :  { %1497 = vmatprep.mubr.f32.mxu0 %v32_v59 }
  0x40   :  { %1498 = vmatmul.mubr.f32.gmra.mrb[14].mxu0 %v33_v62 }
  0x41   :  { %1675 = vmatpush3.bf16.xpose.msra.mxu1 %v1672_v63 }
  0xf7   :  { %v1478_v0 = vpop.f32.mrb[0].mxu0 }
  0xf8   :  { %v116_v1 = vpop.f32.mrb[1].mxu0  ;;  %v196_v3 = vmul.f32 0.70710677, %v1478_v0  ;;  %v1811_v0 = vmov 0.0  }
  0xf9   :  { %v195_v2 = vmul.f32 0.70710677, %v116_v1  ;;  %244 = vst.msk [vmem:[#allocation4] sm:$0xff] %vm227_vm0, %v1811_v0  ;;  %245 = vst.msk [vmem:[#allocation4 + $0x8] sm:$0xff] %vm227_vm0, %v1811_v0 }
  0xfa   :  { %246 = vst.msk [vmem:[#allocation4 + $0x10] sm:$0xff] %vm227_vm0, %v1811_v0  ;;  %247 = vst.msk [vmem:[#allocation4 + $0x18] sm:$0xff] %vm227_vm0, %v1811_v0 }
  0xfb   :  { %v1481_v4 = vpop.f32.mrb[2].mxu0  ;;  %1532 = vmatprep.mubr.f32.mxu1 %v195_v2  ;;  %248 = vst.msk [vmem:[#allocation4 + $0x20] sm:$0xff] %vm227_vm0, %v1811_v0  ;;  %249 = vst.msk [vmem:[#allocation4 + $0x28] sm:$0xff] %vm227_vm0, %v1811_v0 }
  0xfc   :  { %v198_v5 = vmul.f32 0.70710677, %v1481_v4  ;;  %v126_v6 = vpop.f32.mrb[3].mxu0  ;;  %1533 = vmatmul.mubr.f32.vlgmr.msra.gmra.mrb[0].mxu1 %v196_v3  ;;  %250 = vst.msk [vmem:[#allocation4 + $0x30] sm:$0xff] %vm227_vm0, %v1811_v0  ;;  %251 = vst.msk [vmem:[#allocation4 + $0x38] sm:$0xff] %vm227_vm0, %v1811_v0 }
  0xfd   :  { %v197_v7 = vmul.f32 0.70710677, %v126_v6  ;;  %252 = vst.msk [vmem:[#allocation4 + $0x40] sm:$0xff] %vm227_vm0, %v1811_v0  ;;  %253 = vst.msk [vmem:[#allocation4 + $0x48] sm:$0xff] %vm227_vm0, %v1811_v0  ;;  %v279_v6 = vld [vmem:[%s2503_s1 + $0x18] sm:$0xff] }
  0xfe   :  { %254 = vst.msk [vmem:[#allocation4 + $0x50] sm:$0xff] %vm227_vm0, %v1811_v0  ;;  %255 = vst.msk [vmem:[#allocation4 + $0x58] sm:$0xff] %vm227_vm0, %v1811_v0 }
  0xff   :  { %1535 = vmatprep.mubr.f32.mxu1 %v197_v7  ;;  %v1484_v8 = vpop.f32.mrb[4].mxu0  ;;  %256 = vst.msk [vmem:[#allocation4 + $0x60] sm:$0xff] %vm227_vm0, %v1811_v0  ;;  %257 = vst.msk [vmem:[#allocation4 + $0x68] sm:$0xff] %vm227_vm0, %v1811_v0  ;;  %v281_v7 = vld [vmem:[%s2503_s1 + $0x28] sm:$0xff] }
 0x100   :  { %1536 = vmatmul.mubr.f32.gmra.mrb[2].mxu1 %v198_v5  ;;  %v200_v9 = vmul.f32 0.70710677, %v1484_v8  ;;  %v136_v10 = vpop.f32.mrb[5].mxu0  ;;  %258 = vst.msk [vmem:[#allocation4 + $0x70] sm:$0xff] %vm227_vm0, %v1811_v0  ;;  %259 = vst.msk [vmem:[#allocation4 + $0x78] sm:$0xff] %vm227_vm0, %v1811_v0  ;;  %v277_v5 = vld [vmem:[%s2503_s1 + $0x8] sm:$0xff] }
 0x101   :  { %v199_v11 = vmul.f32 0.70710677, %v136_v10  ;;  %v1676_v8 = vpack.c.bf16 %v279_v6, %v277_v5  ;;  %v2197_v6 = vld [vmem:[#allocation3 + $0x40] sm:$0xff] }
 0x103   :  { %v1487_v12 = vpop.f32.mrb[6].mxu0  ;;  %1538 = vmatprep.mubr.f32.mxu1 %v199_v11  ;;  %v285_v11 = vld [vmem:[%s2503_s1 + $0x48] sm:$0xff]  ;;  %1677 = vmatprep.subr.bf16.mxu0 %v1676_v8 }
 0x104   :  { %v202_v13 = vmul.f32 0.70710677, %v1487_v12  ;;  %v146_v14 = vpop.f32.mrb[7].mxu0  ;;  %1539 = vmatmul.mubr.f32.gmra.mrb[4].mxu1 %v200_v9  ;;  %v283_v9 = vld [vmem:[%s2503_s1 + $0x38] sm:$0xff]  ;;  %1679 = vmatpush3.bf16.msra.mxu0 %v1676_v8 }
 0x105   :  { %v201_v15 = vmul.f32 0.70710677, %v146_v14  ;;  %v1680_v10 = vpack.c.bf16 %v283_v9, %v281_v7  ;;  %v287_v12 = vld [vmem:[%s2503_s1 + $0x58] sm:$0xff]  ;;  %v289_v14 = vld [vmem:[%s2503_s1 + $0x68] sm:$0xff] }
 0x106   :  { %v305_v9 = vld [vmem:[%s2503_s1 + $0xe8] sm:$0xff] }
 0x107   :  { %v1490_v16 = vpop.f32.mrb[8].mxu0  ;;  %1541 = vmatprep.mubr.f32.mxu1 %v201_v15  ;;  %1681 = vmatprep.subr.bf16.mxu0 %v1680_v10  ;;  %v291_v15 = vld [vmem:[%s2503_s1 + $0x78] sm:$0xff] }
 0x108   :  { %v204_v17 = vmul.f32 0.70710677, %v1490_v16  ;;  %v156_v18 = vpop.f32.mrb[9].mxu0  ;;  %1542 = vmatmul.mubr.f32.gmra.mrb[6].mxu1 %v202_v13  ;;  %v1684_v13 = vpack.c.bf16 %v287_v12, %v285_v11  ;;  %1683 = vmatpush3.bf16.msra.mxu0 %v1680_v10  ;;  %v1688_v16 = vpack.c.bf16 %v291_v15, %v289_v14  ;;  %v307_v10 = vld [vmem:[%s2503_s1 + $0xf8] sm:$0xff]  ;;  %v2213_v14 = vld [vmem:[#allocation3 + $0x48] sm:$0xff] }
 0x109   :  { %v203_v19 = vmul.f32 0.70710677, %v156_v18 }
 0x10a   :  { %1685 = vmatprep.subr.bf16.mxu0 %v1684_v13 }
 0x10b   :  { %v1493_v20 = vpop.f32.mrb[10].mxu0  ;;  %1544 = vmatprep.mubr.f32.mxu1 %v203_v19 }
 0x10c   :  { %v206_v21 = vmul.f32 0.70710677, %v1493_v20  ;;  %v166_v22 = vpop.f32.mrb[11].mxu0  ;;  %1545 = vmatmul.mubr.f32.gmra.mrb[8].mxu1 %v204_v17  ;;  %1687 = vmatpush3.bf16.msra.mxu0 %v1684_v13  ;;  %v2115_v17 = vld [vmem:[#allocation3] sm:$0xff]  ;;  %v2120_v20 = vld [vmem:[#allocation3 + $0x18] sm:$0xff]  ;;  %v1704_v13 = vpack.c.bf16 %v307_v10, %v305_v9 }
 0x10d   :  { %v205_v23 = vmul.f32 0.70710677, %v166_v22  ;;  %1689 = vmatprep.subr.bf16.mxu0 %v1688_v16 }
 0x10f   :  { %v1496_v24 = vpop.f32.mrb[12].mxu0  ;;  %1547 = vmatprep.mubr.f32.mxu1 %v205_v23 }
 0x110   :  { %v208_v25 = vmul.f32 0.70710677, %v1496_v24  ;;  %v176_v26 = vpop.f32.mrb[13].mxu0  ;;  %1548 = vmatmul.mubr.f32.gmra.mrb[10].mxu1 %v206_v21  ;;  %1691 = vmatpush3.bf16.msra.mxu0 %v1688_v16  ;;  %v2122_v21 = vld [vmem:[#allocation3 + $0x8] sm:$0xff] }
 0x111   :  { %v207_v27 = vmul.f32 0.70710677, %v176_v26  ;;  %v293_v24 = vld [vmem:[%s2503_s1 + $0x88] sm:$0xff] }
 0x113   :  { %v1499_v28 = vpop.f32.mrb[14].mxu0  ;;  %1550 = vmatprep.mubr.f32.mxu1 %v207_v27 }
 0x114   :  { %v210_v29 = vmul.f32 0.70710677, %v1499_v28  ;;  %v186_v30 = vpop.f32.mrb[15].mxu0  ;;  %1551 = vmatmul.mubr.f32.gmra.mrb[12].mxu1 %v208_v25  ;;  %v295_v25 = vld [vmem:[%s2503_s1 + $0x98] sm:$0xff] }
 0x115   :  { %v209_v31 = vmul.f32 0.70710677, %v186_v30  ;;  %v1692_v28 = vpack.c.bf16 %v295_v25, %v293_v24  ;;  %v2141_v30 = vld [vmem:[#allocation3 + $0x10] sm:$0xff] }
 0x117   :  { %1553 = vmatprep.mubr.f32.mxu1 %v209_v31  ;;  %1693 = vmatprep.subr.bf16.mxu0 %v1692_v28 }
 0x118   :  { %1554 = vmatmul.mubr.f32.gmra.mrb[14].mxu1 %v210_v29  ;;  %1695 = vmatpush3.bf16.msra.mxu0 %v1692_v28  ;;  %v2232_v28 = vld [vmem:[#allocation3 + $0x58] sm:$0xff] }
 0x1cf   :  { %v1534_v35 = vpop.f32.mrb[0].mxu1 }
 0x1d0   :  { %v390_v36 = vpop.f32.mrb[1].mxu1  ;;  %v2007_v41 = vsel %vm474_vm1, %v1534_v35, -1e+30  ;;  %v297_v35 = vld [vmem:[%s2503_s1 + $0xa8] sm:$0xff] }
 0x1d1   :  { %v1997_v37 = vsel %vm474_vm1, %v390_v36, -1e+30  ;;  %v299_v36 = vld [vmem:[%s2503_s1 + $0xb8] sm:$0xff] }
 0x1d2   :  { %507 = vmax.xlane.f32.xlu0 %v1997_v37 }
 0x1d3   :  { %v1537_v38 = vpop.f32.mrb[2].mxu1 }
 0x1d4   :  { %v2002_v39 = vsel %vm474_vm1, %v1537_v38, -1e+30  ;;  %v400_v40 = vpop.f32.mrb[3].mxu1 }
 0x1d5   :  { %513 = vmax.xlane.f32.xlu1 %v2002_v39  ;;  %v2012_v42 = vsel %vm474_vm1, %v400_v40, -1e+30 }
 0x1d6   :  { %509 = vmax.xlane.f32.xlu0 %v2007_v41 }
 0x1d7   :  { %v1540_v43 = vpop.f32.mrb[4].mxu1 }
 0x1d8   :  { %v410_v44 = vpop.f32.mrb[5].mxu1  ;;  %v2021_v46 = vsel %vm474_vm1, %v1540_v43, -1e+30  ;;  %v1696_v43 = vpack.c.bf16 %v299_v36, %v297_v35  ;;  %v2242_v36 = vld [vmem:[#allocation3 + $0x60] sm:$0xff] }
 0x1d9   :  { %511 = vmax.xlane.f32.xlu1 %v2012_v42  ;;  %v2017_v45 = vsel %vm474_vm1, %v410_v44, -1e+30  ;;  %v2163_v44 = vld [vmem:[#allocation3 + $0x28] sm:$0xff] }
 0x1da   :  { %515 = vmax.xlane.f32.xlu0 %v2017_v45  ;;  %1697 = vmatprep.subr.bf16.mxu0 %v1696_v43 }
 0x1db   :  { %v1543_v47 = vpop.f32.mrb[6].mxu1  ;;  %1699 = vmatpush3.bf16.msra.mxu0 %v1696_v43 }
 0x1dc   :  { %v420_v48 = vpop.f32.mrb[7].mxu1  ;;  %v2031_v50 = vsel %vm474_vm1, %v1543_v47, -1e+30 }
 0x1dd   :  { %517 = vmax.xlane.f32.xlu1 %v2021_v46  ;;  %v2027_v49 = vsel %vm474_vm1, %v420_v48, -1e+30 }
 0x1de   :  { %519 = vmax.xlane.f32.xlu0 %v2027_v49 }
 0x1df   :  { %v1546_v51 = vpop.f32.mrb[8].mxu1 }
 0x1e0   :  { %v430_v52 = vpop.f32.mrb[9].mxu1  ;;  %v2041_v55 = vsel %vm474_vm1, %v1546_v51, -1e+30  ;;  %v2172_v51 = vld [vmem:[#allocation3 + $0x30] sm:$0xff] }
 0x1e1   :  { %521 = vmax.xlane.f32.xlu1 %v2031_v50  ;;  %v2037_v53 = vsel %vm474_vm1, %v430_v52, -1e+30 }
 0x1e2   :  { %523 = vmax.xlane.f32.xlu0 %v2037_v53 }
 0x1e3   :  { %v1549_v56 = vpop.f32.mrb[10].mxu1 }
 0x1e4   :  { %v440_v57 = vpop.f32.mrb[11].mxu1  ;;  %v2051_v59 = vsel %vm474_vm1, %v1549_v56, -1e+30  ;;  %v301_v56 = vld [vmem:[%s2503_s1 + $0xc8] sm:$0xff] }
 0x1e5   :  { %525 = vmax.xlane.f32.xlu1 %v2041_v55  ;;  %v2047_v58 = vsel %vm474_vm1, %v440_v57, -1e+30  ;;  %v303_v57 = vld [vmem:[%s2503_s1 + $0xd8] sm:$0xff] }
 0x1e6   :  { %527 = vmax.xlane.f32.xlu0 %v2047_v58  ;;  %v1700_v0 = vpack.c.bf16 %v303_v57, %v301_v56  ;;  %v2252_v57 = vld [vmem:[#allocation3 + $0x68] sm:$0xff] }
 0x1e7   :  { %v1552_v60 = vpop.f32.mrb[12].mxu1 }
 0x1e8   :  { %v450_v61 = vpop.f32.mrb[13].mxu1  ;;  %v2061_v63 = vsel %vm474_vm1, %v1552_v60, -1e+30  ;;  %1701 = vmatprep.subr.bf16.mxu0 %v1700_v0 }
 0x1e9   :  { %529 = vmax.xlane.f32.xlu1 %v2051_v59  ;;  %v2057_v62 = vsel %vm474_vm1, %v450_v61, -1e+30  ;;  %1703 = vmatpush3.bf16.msra.mxu0 %v1700_v0 }
 0x1ea   :  { %531 = vmax.xlane.f32.xlu0 %v2057_v62  ;;  %1705 = vmatprep.subr.bf16.mxu0 %v1704_v13 }
 0x1eb   :  { %v1555_v1 = vpop.f32.mrb[14].mxu1 }
 0x1ec   :  { %v460_v2 = vpop.f32.mrb[15].mxu1  ;;  %v2087_v4 = vsel %vm474_vm1, %v1555_v1, -1e+30  ;;  %v2188_v1 = vld [vmem:[#allocation3 + $0x38] sm:$0xff] }
 0x1ed   :  { %533 = vmax.xlane.f32.xlu1 %v2061_v63  ;;  %v2083_v3 = vsel %vm474_vm1, %v460_v2, -1e+30  ;;  %1707 = vmatpush3.bf16.msra.mxu0 %v1704_v13 }
 0x1ee   :  { %535 = vmax.xlane.f32.xlu0 %v2083_v3 }
 0x1f1   :  { %537 = vmax.xlane.f32.xlu1 %v2087_v4 }
 0x25f   :  { %v508_v18 = vpop.xlane.xlu0 %507 }
 0x260   :  { %v2118_v19 = vmax.f32 %v2115_v17, %v508_v18  ;;  %v2222_v18 = vld [vmem:[#allocation3 + $0x50] sm:$0xff] }
 0x262   :  { %1117 = vst.msk [vmem:[#allocation3] sm:$0xff] %vm227_vm0, %v2118_v19  ;;  %v514_v23 = vpop.xlane.xlu1 %513  ;;  %605 = vperm.xlu0 %1711, %v2118_v19  }
 0x263   :  { %v2136_v26 = vmax.f32 %v2120_v20, %v514_v23  ;;  %v510_v27 = vpop.xlane.xlu0 %509 }
 0x264   :  { %v2139_v29 = vmax.f32 %v2122_v21, %v510_v27 }
 0x265   :  { %1120 = vst.msk [vmem:[#allocation3 + $0x18] sm:$0xff] %vm227_vm0, %v2136_v26 }
 0x266   :  { %v556_v33 = vsub.f32 %v2122_v21, %v2139_v29  ;;  %1118 = vst.msk [vmem:[#allocation3 + $0x8] sm:$0xff] %vm227_vm0, %v2139_v29  ;;  %v512_v34 = vpop.xlane.xlu1 %511  ;;  %610 = vperm.xlu1 %1712, %v2139_v29   ;;  %v2507_v21 = vsub.f32 %v2120_v20, %v2136_v26 }
 0x267   :  { %v2161_v38 = vmax.f32 %v2141_v30, %v512_v34  ;;  %v516_v40 = vpop.xlane.xlu0 %515 }
 0x268   :  { %v2166_v47 = vmax.f32 %v2147_v32, %v516_v40  ;;  %v577_v29 = vmul.f32 1.442695, %v2507_v21 }
 0x269   :  { %v557_v48 = vsub.f32 %v2141_v30, %v2161_v38  ;;  %1119 = vst.msk [vmem:[#allocation3 + $0x10] sm:$0xff] %vm227_vm0, %v2161_v38 }
 0x26a   :  { %v518_v52 = vpop.xlane.xlu1 %517  ;;  %620 = vperm.xlu1 %1712, %v2136_v26   ;;  %1121 = vst.msk [vmem:[#allocation3 + $0x20] sm:$0xff] %vm227_vm0, %v2166_v47 }
 0x26b   :  { %v2186_v60 = vmax.f32 %v2163_v44, %v518_v52  ;;  %v520_v61 = vpop.xlane.xlu0 %519 }
 0x26c   :  { %v2191_v2 = vmax.f32 %v2172_v51, %v520_v61 }
 0x26d   :  { %1122 = vst.msk [vmem:[#allocation3 + $0x28] sm:$0xff] %vm227_vm0, %v2186_v60 }
 0x26e   :  { %v522_v7 = vpop.xlane.xlu1 %521  ;;  %615 = vperm.xlu1 %1712, %v2161_v38   ;;  %1123 = vst.msk [vmem:[#allocation3 + $0x30] sm:$0xff] %vm227_vm0, %v2191_v2 }
 0x26f   :  { %v2211_v11 = vmax.f32 %v2188_v1, %v522_v7  ;;  %v524_v12 = vpop.xlane.xlu0 %523  ;;  %v2262_v7 = vld [vmem:[#allocation3 + $0x70] sm:$0xff] }
 0x270   :  { %v2216_v15 = vmax.f32 %v2197_v6, %v524_v12 }
 0x271   :  { %1124 = vst.msk [vmem:[#allocation3 + $0x38] sm:$0xff] %vm227_vm0, %v2211_v11  ;;  %v2511_v20 = vsub.f32 %v2188_v1, %v2211_v11 }
 0x272   :  { %v526_v23 = vpop.xlane.xlu1 %525  ;;  %630 = vperm.xlu1 %1712, %v2186_v60   ;;  %1125 = vst.msk [vmem:[#allocation3 + $0x40] sm:$0xff] %vm227_vm0, %v2216_v15 }
 0x273   :  { %v2230_v25 = vmax.f32 %v2213_v14, %v526_v23  ;;  %v528_v27 = vpop.xlane.xlu0 %527  ;;  %v2272_v23 = vld [vmem:[#allocation3 + $0x78] sm:$0xff]  ;;  %v585_v26 = vmul.f32 1.442695, %v2511_v20  ;;  %v737_v20 = vld [vmem:[#allocation4 + $0x30] sm:$0xff] }
 0x274   :  { %v2235_v34 = vmax.f32 %v2222_v18, %v528_v27 }
 0x275   :  { %1126 = vst.msk [vmem:[#allocation3 + $0x48] sm:$0xff] %vm227_vm0, %v2230_v25  ;;  %650 = vperm.xlu0 %1711, %v2230_v25  }
 0x276   :  { %v530_v40 = vpop.xlane.xlu1 %529  ;;  %625 = vperm.xlu1 %1712, %v2166_v47   ;;  %1127 = vst.msk [vmem:[#allocation3 + $0x50] sm:$0xff] %vm227_vm0, %v2235_v34 }
 0x277   :  { %v2250_v52 = vmax.f32 %v2232_v28, %v530_v40  ;;  %v532_v56 = vpop.xlane.xlu0 %531 }
 0x278   :  { %v2255_v61 = vmax.f32 %v2242_v36, %v532_v56 }
 0x279   :  { %1128 = vst.msk [vmem:[#allocation3 + $0x58] sm:$0xff] %vm227_vm0, %v2250_v52  ;;  %660 = vperm.xlu0 %1711, %v2250_v52  }
 0x27a   :  { %v534_v9 = vpop.xlane.xlu1 %533  ;;  %640 = vperm.xlu1 %1712, %v2211_v11   ;;  %1129 = vst.msk [vmem:[#allocation3 + $0x60] sm:$0xff] %vm227_vm0, %v2255_v61  ;;  %v2514_v1 = vsub.f32 %v2242_v36, %v2255_v61 }
 0x27b   :  { %v2270_v12 = vmax.f32 %v2252_v57, %v534_v9  ;;  %v536_v13 = vpop.xlane.xlu0 %535 }
 0x27c   :  { %v2275_v27 = vmax.f32 %v2262_v7, %v536_v13  ;;  %v595_v11 = vmul.f32 1.442695, %v2514_v1 }
 0x27d   :  { %1130 = vst.msk [vmem:[#allocation3 + $0x68] sm:$0xff] %vm227_vm0, %v2270_v12  ;;  %670 = vperm.xlu0 %1711, %v2270_v12   ;;  %v2517_v36 = vsub.f32 %v2252_v57, %v2270_v12 }
 0x27e   :  { %635 = vperm.xlu1 %1712, %v2191_v2   ;;  %v538_v56 = vpop.xlane.xlu1 %537  ;;  %1131 = vst.msk [vmem:[#allocation3 + $0x70] sm:$0xff] %vm227_vm0, %v2275_v27 }
 0x27f   :  { %v2288_v13 = vmax.f32 %v2272_v23, %v538_v56 }
 0x281   :  { %1132 = vst.msk [vmem:[#allocation3 + $0x78] sm:$0xff] %vm227_vm0, %v2288_v13  ;;  %680 = vperm.xlu0 %1711, %v2288_v13  }
 0x282   :  { %645 = vperm.xlu1 %1712, %v2216_v15  }
 0x286   :  { %655 = vperm.xlu1 %1712, %v2235_v34  }
 0x28a   :  { %665 = vperm.xlu1 %1712, %v2255_v61  }
 0x28e   :  { %675 = vperm.xlu1 %1712, %v2275_v27  }
 0x2e1   :  { %v606_v9 = vpop.permute.xlu0 %605 }
 0x2e2   :  { %v683_v56 = vsub.f32 %v1997_v37, %v606_v9 }
 0x2e4   :  { %v699_v0 = vmul.f32 1.442695, %v683_v56 }
 0x2e5   :  { %v611_v10 = vpop.permute.xlu1 %610 }
 0x2e6   :  { %1713 = vpow2.f32 %v699_v0  ;;  %v684_v40 = vsub.f32 %v2007_v41, %v611_v10 }
 0x2e8   :  { %v701_v35 = vmul.f32 1.442695, %v684_v40 }
 0x2e9   :  { %v621_v43 = vpop.permute.xlu1 %620 }
 0x2ea   :  { %1715 = vpow2.f32 %v701_v35  ;;  %v686_v16 = vsub.f32 %v2002_v39, %v621_v43 }
 0x2ec   :  { %v705_v24 = vmul.f32 1.442695, %v686_v16 }
 0x2ed   :  { %v616_v5 = vpop.permute.xlu1 %615 }
 0x2ee   :  { %1717 = vpow2.f32 %v705_v24  ;;  %v685_v8 = vsub.f32 %v2012_v42, %v616_v5 }
 0x2f0   :  { %v1714_v31 = vpop.eup %1713  ;;  %v703_v54 = vmul.f32 1.442695, %v685_v8 }
 0x2f1   :  { %v631_v22 = vpop.permute.xlu1 %630  ;;  %763 = vadd.xlane.f32.xlu1 %v1714_v31  ;;  %1588 = vmatprep.mubr.f32.mxu0 %v1714_v31 }
 0x2f2   :  { %1719 = vpow2.f32 %v703_v54  ;;  %v688_v37 = vsub.f32 %v2021_v46, %v631_v22 }
 0x2f4   :  { %v1716_v0 = vpop.eup %1715  ;;  %v709_v41 = vmul.f32 1.442695, %v688_v37  ;;  %v651_v10 = vpop.permute.xlu0 %650 }
 0x2f5   :  { %v626_v40 = vpop.permute.xlu1 %625  ;;  %765 = vadd.xlane.f32.xlu0 %v1716_v0  ;;  %1589 = vmatmul.mubr.f32.vlgmr.msra.gmra.mrb[16].mxu0 %v1716_v0  ;;  %v692_v54 = vsub.f32 %v2041_v55, %v651_v10 }
 0x2f6   :  { %1721 = vpow2.f32 %v709_v41  ;;  %v687_v39 = vsub.f32 %v2017_v45, %v626_v40 }
 0x2f7   :  { %v717_v45 = vmul.f32 1.442695, %v692_v54 }
 0x2f8   :  { %v1718_v16 = vpop.eup %1717  ;;  %v707_v24 = vmul.f32 1.442695, %v687_v39  ;;  %v661_v42 = vpop.permute.xlu0 %660 }
 0x2f9   :  { %v641_v5 = vpop.permute.xlu1 %640  ;;  %769 = vadd.xlane.f32.xlu1 %v1718_v16  ;;  %v694_v9 = vsub.f32 %v2051_v59, %v661_v42 }
 0x2fa   :  { %1723 = vpow2.f32 %v707_v24  ;;  %v690_v31 = vsub.f32 %v2031_v50, %v641_v5 }
 0x2fb   :  { %v721_v55 = vmul.f32 1.442695, %v694_v9 }
 0x2fc   :  { %v1720_v46 = vpop.eup %1719  ;;  %v713_v22 = vmul.f32 1.442695, %v690_v31  ;;  %v671_v35 = vpop.permute.xlu0 %670 }
 0x2fd   :  { %v636_v8 = vpop.permute.xlu1 %635  ;;  %767 = vadd.xlane.f32.xlu0 %v1720_v46  ;;  %1591 = vmatprep.mubr.f32.mxu0 %v1720_v46  ;;  %v696_v41 = vsub.f32 %v2061_v63, %v671_v35 }
 0x2fe   :  { %1725 = vpow2.f32 %v713_v22  ;;  %v689_v43 = vsub.f32 %v2027_v49, %v636_v8  ;;  %1592 = vmatmul.mubr.f32.gmra.mrb[18].mxu0 %v1718_v16 }
 0x2ff   :  { %v725_v59 = vmul.f32 1.442695, %v696_v41  ;;  %v2506_v41 = vsub.f32 %v2147_v32, %v2166_v47  ;;  %v2510_v32 = vsub.f32 %v2197_v6, %v2216_v15  ;;  %v2513_v6 = vsub.f32 %v2213_v14, %v2230_v25 }
 0x300   :  { %v1722_v56 = vpop.eup %1721  ;;  %v711_v37 = vmul.f32 1.442695, %v689_v43  ;;  %v681_v40 = vpop.permute.xlu0 %680  ;;  %v2516_v14 = vsub.f32 %v2262_v7, %v2275_v27  ;;  %v2518_v7 = vsub.f32 %v2272_v23, %v2288_v13  ;;  %v731_v13 = vld [vmem:[#allocation4] sm:$0xff] }
 0x301   :  { %v646_v0 = vpop.permute.xlu1 %645  ;;  %773 = vadd.xlane.f32.xlu1 %v1722_v56  ;;  %v698_v16 = vsub.f32 %v2087_v4, %v681_v40  ;;  %v587_v47 = vmul.f32 1.442695, %v2510_v32  ;;  %v589_v15 = vmul.f32 1.442695, %v2513_v6 }
 0x302   :  { %1727 = vpow2.f32 %v711_v37  ;;  %v691_v50 = vsub.f32 %v2037_v53, %v646_v0  ;;  %v573_v37 = vmul.f32 1.442695, %v556_v33  ;;  %v575_v0 = vmul.f32 1.442695, %v557_v48 }
 0x303   :  { %1729 = vpow2.f32 %v717_v45  ;;  %v729_v31 = vmul.f32 1.442695, %v698_v16  ;;  %v2508_v33 = vsub.f32 %v2172_v51, %v2191_v2  ;;  %v599_v25 = vmul.f32 1.442695, %v2516_v14 }
 0x304   :  { %v1724_v10 = vpop.eup %1723  ;;  %v715_v39 = vmul.f32 1.442695, %v691_v50  ;;  %v2505_v50 = vsub.f32 %v2115_v17, %v2118_v19  ;;  %v2509_v17 = vsub.f32 %v2163_v44, %v2186_v60  ;;  %v2512_v44 = vsub.f32 %v2222_v18, %v2235_v34 }
 0x305   :  { %v656_v24 = vpop.permute.xlu1 %655  ;;  %771 = vadd.xlane.f32.xlu0 %v1724_v10  ;;  %1594 = vmatprep.mubr.f32.mxu0 %v1724_v10  ;;  %v579_v10 = vmul.f32 1.442695, %v2506_v41  ;;  %v583_v30 = vmul.f32 1.442695, %v2508_v33  ;;  %v2515_v18 = vsub.f32 %v2232_v28, %v2250_v52  ;;  %v597_v28 = vmul.f32 1.442695, %v2517_v36 }
 0x306   :  { %1731 = vpow2.f32 %v715_v39  ;;  %v693_v49 = vsub.f32 %v2047_v58, %v656_v24  ;;  %1595 = vmatmul.mubr.f32.gmra.mrb[20].mxu0 %v1722_v56  ;;  %v581_v19 = vmul.f32 1.442695, %v2509_v17  ;;  %v591_v51 = vmul.f32 1.442695, %v2512_v44  ;;  %v738_v33 = vld [vmem:[#allocation4 + $0x38] sm:$0xff] }
 0x307   :  { %1733 = vpow2.f32 %v721_v55  ;;  %v571_v55 = vmul.f32 1.442695, %v2505_v50  ;;  %v593_v34 = vmul.f32 1.442695, %v2515_v18  ;;  %v601_v27 = vmul.f32 1.442695, %v2518_v7 }
 0x308   :  { %v1726_v42 = vpop.eup %1725  ;;  %v719_v53 = vmul.f32 1.442695, %v693_v49  ;;  %v739_v18 = vld [vmem:[#allocation4 + $0x40] sm:$0xff] }
 0x309   :  { %v666_v5 = vpop.permute.xlu1 %665  ;;  %777 = vadd.xlane.f32.xlu1 %v1726_v42 }
 0x30a   :  { %1735 = vpow2.f32 %v719_v53  ;;  %v695_v63 = vsub.f32 %v2057_v62, %v666_v5 }
 0x30b   :  { %1737 = vpow2.f32 %v725_v59 }
 0x30c   :  { %v1728_v54 = vpop.eup %1727  ;;  %v723_v46 = vmul.f32 1.442695, %v695_v63  ;;  %v732_v63 = vld [vmem:[#allocation4 + $0x8] sm:$0xff] }
 0x30d   :  { %v1730_v22 = vpop.eup %1729  ;;  %775 = vadd.xlane.f32.xlu0 %v1728_v54  ;;  %v676_v8 = vpop.permute.xlu1 %675  ;;  %1597 = vmatprep.mubr.f32.mxu0 %v1728_v54 }
 0x30e   :  { %1739 = vpow2.f32 %v723_v46  ;;  %v697_v58 = vsub.f32 %v2083_v3, %v676_v8  ;;  %781 = vadd.xlane.f32.xlu1 %v1730_v22  ;;  %1598 = vmatmul.mubr.f32.gmra.mrb[22].mxu0 %v1726_v42 }
 0x30f   :  { %1741 = vpow2.f32 %v729_v31 }
 0x310   :  { %v1732_v4 = vpop.eup %1731  ;;  %v727_v35 = vmul.f32 1.442695, %v697_v58 }
 0x311   :  { %v1734_v43 = vpop.eup %1733  ;;  %779 = vadd.xlane.f32.xlu0 %v1732_v4  ;;  %1600 = vmatprep.mubr.f32.mxu0 %v1732_v4 }
 0x312   :  { %1743 = vpow2.f32 %v727_v35  ;;  %785 = vadd.xlane.f32.xlu1 %v1734_v43  ;;  %1601 = vmatmul.mubr.f32.gmra.mrb[24].mxu0 %v1730_v22  ;;  %v734_v22 = vld [vmem:[#allocation4 + $0x18] sm:$0xff]  ;;  %v733_v35 = vld [vmem:[#allocation4 + $0x10] sm:$0xff] }
 0x313   :  { %1745 = vpow2.f32 %v573_v37 }
 0x314   :  { %v1736_v62 = vpop.eup %1735  ;;  %1747 = vpow2.f32 %v575_v0 }
 0x315   :  { %v1738_v45 = vpop.eup %1737  ;;  %783 = vadd.xlane.f32.xlu0 %v1736_v62  ;;  %1603 = vmatprep.mubr.f32.mxu0 %v1736_v62  ;;  %1749 = vpow2.f32 %v571_v55  ;;  %v735_v55 = vld [vmem:[#allocation4 + $0x20] sm:$0xff] }
 0x316   :  { %789 = vadd.xlane.f32.xlu1 %v1738_v45  ;;  %1604 = vmatmul.mubr.f32.gmra.mrb[26].mxu0 %v1734_v43  ;;  %1751 = vpow2.f32 %v579_v10 }
 0x317   :  { %1753 = vpow2.f32 %v577_v29 }
 0x318   :  { %v1740_v9 = vpop.eup %1739  ;;  %1755 = vpow2.f32 %v583_v30 }
 0x319   :  { %v1742_v56 = vpop.eup %1741  ;;  %787 = vadd.xlane.f32.xlu0 %v1740_v9  ;;  %1606 = vmatprep.mubr.f32.mxu0 %v1740_v9  ;;  %1757 = vpow2.f32 %v581_v19 }
 0x31a   :  { %793 = vadd.xlane.f32.xlu1 %v1742_v56  ;;  %1607 = vmatmul.mubr.f32.gmra.mrb[28].mxu0 %v1738_v45  ;;  %1759 = vpow2.f32 %v587_v47 }
 0x31b   :  { %1761 = vpow2.f32 %v585_v26 }
 0x31c   :  { %v1744_v3 = vpop.eup %1743  ;;  %1763 = vpow2.f32 %v591_v51  ;;  %v740_v51 = vld [vmem:[#allocation4 + $0x48] sm:$0xff] }
 0x31d   :  { %791 = vadd.xlane.f32.xlu0 %v1744_v3  ;;  %1609 = vmatprep.mubr.f32.mxu0 %v1744_v3  ;;  %v1746_v38 = vpop.eup %1745  ;;  %1765 = vpow2.f32 %v589_v15 }
 0x31e   :  { %1610 = vmatmul.mubr.f32.gmra.mrb[30].mxu0 %v1742_v56  ;;  %v2339_v48 = vpop.eup %1747  ;;  %1767 = vpow2.f32 %v595_v11  ;;  %v748_v54 = vmul.f32 %v1746_v38, %v732_v63  ;;  %v736_v56 = vld [vmem:[#allocation4 + $0x28] sm:$0xff] }
 0x31f   :  { %v1750_v60 = vpop.eup %1749  ;;  %1769 = vpow2.f32 %v593_v34  ;;  %v749_v45 = vmul.f32 %v2339_v48, %v733_v35 }
 0x320   :  { %v2348_v2 = vpop.eup %1751  ;;  %1771 = vpow2.f32 %v599_v25  ;;  %v747_v53 = vmul.f32 %v1750_v60, %v731_v13 }
 0x321   :  { %v1754_v40 = vpop.eup %1753  ;;  %1773 = vpow2.f32 %v597_v28  ;;  %v751_v21 = vmul.f32 %v2348_v2, %v735_v55 }
 0x322   :  { %v2357_v39 = vpop.eup %1755  ;;  %1775 = vpow2.f32 %v601_v27  ;;  %v750_v58 = vmul.f32 %v1754_v40, %v734_v22 }
 0x323   :  { %v1758_v24 = vpop.eup %1757  ;;  %v753_v15 = vmul.f32 %v2357_v39, %v737_v20 }
 0x324   :  { %v2366_v49 = vpop.eup %1759  ;;  %v752_v0 = vmul.f32 %v1758_v24, %v736_v56  ;;  %v746_v56 = vld [vmem:[#allocation4 + $0x78] sm:$0xff] }
 0x325   :  { %v1762_v52 = vpop.eup %1761  ;;  %v755_v27 = vmul.f32 %v2366_v49, %v739_v18 }
 0x326   :  { %v2372_v61 = vpop.eup %1763  ;;  %v754_v32 = vmul.f32 %v1762_v52, %v738_v33 }
 0x327   :  { %v2378_v59 = vpop.eup %1765 }
 0x328   :  { %v2380_v16 = vpop.eup %1767  ;;  %v756_v1 = vmul.f32 %v2378_v59, %v740_v51 }
 0x329   :  { %v2384_v57 = vpop.eup %1769 }
 0x32a   :  { %v2386_v12 = vpop.eup %1771 }
 0x32b   :  { %851 = vperm.xlu1 %1712, %v1746_v38   ;;  %v2390_v42 = vpop.eup %1773 }
 0x32c   :  { %v2393_v23 = vpop.eup %1775 }
 0x32f   :  { %856 = vperm.xlu1 %1712, %v2339_v48  }
 0x333   :  { %866 = vperm.xlu1 %1712, %v2348_v2   ;;  %846 = vperm.xlu0 %1711, %v1750_v60  }
 0x337   :  { %876 = vperm.xlu1 %1712, %v2357_v39   ;;  %861 = vperm.xlu0 %1711, %v1754_v40  }
 0x33b   :  { %886 = vperm.xlu1 %1712, %v2366_v49   ;;  %871 = vperm.xlu0 %1711, %v1758_v24   ;;  %v742_v24 = vld [vmem:[#allocation4 + $0x58] sm:$0xff] }
 0x33c   :  { %v758_v39 = vmul.f32 %v2384_v57, %v742_v24 }
 0x33f   :  { %896 = vperm.xlu1 %1712, %v2372_v61   ;;  %881 = vperm.xlu0 %1711, %v1762_v52  }
 0x343   :  { %906 = vperm.xlu1 %1712, %v2380_v16   ;;  %891 = vperm.xlu0 %1711, %v2378_v59  }
 0x347   :  { %916 = vperm.xlu1 %1712, %v2386_v12   ;;  %901 = vperm.xlu0 %1711, %v2384_v57  }
 0x34b   :  { %911 = vperm.xlu0 %1711, %v2390_v42  }
 0x34f   :  { %921 = vperm.xlu0 %1711, %v2393_v23  }
 0x37e   :  { %v764_v5 = vpop.xlane.xlu1 %763 }
 0x37f   :  { %v795_v31 = vadd.f32 %v764_v5, %v747_v53  ;;  %v741_v53 = vld [vmem:[#allocation4 + $0x50] sm:$0xff] }
 0x380   :  { %v757_v49 = vmul.f32 %v2372_v61, %v741_v53 }
 0x381   :  { %812 = vst.msk [vmem:[#allocation4] sm:$0xff] %vm227_vm0, %v795_v31 }
 0x382   :  { %v766_v46 = vpop.xlane.xlu0 %765 }
 0x383   :  { %v796_v8 = vadd.f32 %v766_v46, %v748_v54  ;;  %v744_v54 = vld [vmem:[#allocation4 + $0x68] sm:$0xff] }
 0x384   :  { %v760_v57 = vmul.f32 %v2390_v42, %v744_v54  ;;  %v762_v42 = vmul.f32 %v2393_v23, %v746_v56 }
 0x385   :  { %813 = vst.msk [vmem:[#allocation4 + $0x8] sm:$0xff] %vm227_vm0, %v796_v8 }
 0x386   :  { %v770_v4 = vpop.xlane.xlu1 %769 }
 0x387   :  { %v798_v43 = vadd.f32 %v770_v4, %v750_v58 }
 0x388   :  { %v1136_v62 = vld [vmem:[#allocation4] sm:$0xff] }
 0x389   :  { %815 = vst.msk [vmem:[#allocation4 + $0x18] sm:$0xff] %vm227_vm0, %v798_v43  ;;  %1777 = vrcp.f32 %v1136_v62  ;;  %v743_v43 = vld [vmem:[#allocation4 + $0x60] sm:$0xff] }
 0x38a   :  { %v768_v9 = vpop.xlane.xlu0 %767  ;;  %v759_v61 = vmul.f32 %v2380_v16, %v743_v43 }
 0x38b   :  { %v797_v3 = vadd.f32 %v768_v9, %v749_v45 }
 0x38c   :  { %v1137_v37 = vld [vmem:[#allocation4 + $0x8] sm:$0xff] }
 0x38d   :  { %814 = vst.msk [vmem:[#allocation4 + $0x10] sm:$0xff] %vm227_vm0, %v797_v3  ;;  %1779 = vrcp.f32 %v1137_v37 }
 0x38e   :  { %v774_v50 = vpop.xlane.xlu1 %773 }
 0x38f   :  { %v800_v41 = vadd.f32 %v774_v50, %v752_v0 }
 0x390   :  { %v1139_v10 = vld [vmem:[#allocation4 + $0x18] sm:$0xff] }
 0x391   :  { %817 = vst.msk [vmem:[#allocation4 + $0x28] sm:$0xff] %vm227_vm0, %v800_v41  ;;  %1781 = vrcp.f32 %v1139_v10 }
 0x392   :  { %v772_v29 = vpop.xlane.xlu0 %771 }
 0x393   :  { %v1778_v30 = vpop.eup %1777  ;;  %v799_v38 = vadd.f32 %v772_v29, %v751_v21  ;;  %v745_v21 = vld [vmem:[#allocation4 + $0x70] sm:$0xff] }
 0x394   :  { %v1168_v17 = vmul.f32 %v1778_v30, %v1136_v62  ;;  %v1138_v19 = vld [vmem:[#allocation4 + $0x10] sm:$0xff]  ;;  %v761_v16 = vmul.f32 %v2386_v12, %v745_v21 }
 0x395   :  { %816 = vst.msk [vmem:[#allocation4 + $0x20] sm:$0xff] %vm227_vm0, %v799_v38  ;;  %1783 = vrcp.f32 %v1138_v19 }
 0x396   :  { %v778_v47 = vpop.xlane.xlu1 %777  ;;  %v1184_v48 = vsub.f32 2.0, %v1168_v17 }
 0x397   :  { %v1780_v26 = vpop.eup %1779  ;;  %v802_v44 = vadd.f32 %v778_v47, %v754_v32 }
 0x398   :  { %v1200_v60 = vmul.f32 %v1778_v30, %v1184_v48  ;;  %v1169_v6 = vmul.f32 %v1780_v26, %v1137_v37  ;;  %v1141_v2 = vld [vmem:[#allocation4 + $0x28] sm:$0xff] }
 0x399   :  { %819 = vst.msk [vmem:[#allocation4 + $0x38] sm:$0xff] %vm227_vm0, %v802_v44  ;;  %1785 = vrcp.f32 %v1141_v2 }
 0x39a   :  { %1234 = vperm.xlu1 %1712, %v1200_v60   ;;  %v776_v11 = vpop.xlane.xlu0 %775  ;;  %v1185_v40 = vsub.f32 2.0, %v1169_v6 }
 0x39b   :  { %v1782_v34 = vpop.eup %1781  ;;  %v782_v14 = vpop.xlane.xlu1 %781  ;;  %v801_v25 = vadd.f32 %v776_v11, %v753_v15 }
 0x39c   :  { %v804_v36 = vadd.f32 %v782_v14, %v756_v1  ;;  %v1201_v28 = vmul.f32 %v1780_v26, %v1185_v40  ;;  %v1171_v52 = vmul.f32 %v1782_v34, %v1139_v10  ;;  %v1140_v7 = vld [vmem:[#allocation4 + $0x20] sm:$0xff] }
 0x39d   :  { %818 = vst.msk [vmem:[#allocation4 + $0x30] sm:$0xff] %vm227_vm0, %v801_v25  ;;  %1787 = vrcp.f32 %v1140_v7 }
 0x39e   :  { %821 = vst.msk [vmem:[#allocation4 + $0x48] sm:$0xff] %vm227_vm0, %v804_v36  ;;  %1239 = vperm.xlu0 %1711, %v1201_v28   ;;  %v780_v59 = vpop.xlane.xlu0 %779  ;;  %v1187_v13 = vsub.f32 2.0, %v1171_v52 }
 0x39f   :  { %v1784_v5 = vpop.eup %1783  ;;  %v786_v63 = vpop.xlane.xlu1 %785  ;;  %v803_v31 = vadd.f32 %v780_v59, %v755_v27 }
 0x3a0   :  { %v806_v46 = vadd.f32 %v786_v63, %v758_v39  ;;  %v1203_v22 = vmul.f32 %v1782_v34, %v1187_v13  ;;  %v1170_v8 = vmul.f32 %v1784_v5, %v1138_v19  ;;  %v1143_v58 = vld [vmem:[#allocation4 + $0x38] sm:$0xff] }
 0x3a1   :  { %820 = vst.msk [vmem:[#allocation4 + $0x40] sm:$0xff] %vm227_vm0, %v803_v31  ;;  %1789 = vrcp.f32 %v1143_v58 }
 0x3a2   :  { %823 = vst.msk [vmem:[#allocation4 + $0x58] sm:$0xff] %vm227_vm0, %v806_v46  ;;  %1249 = vperm.xlu0 %1711, %v1203_v22   ;;  %v784_v4 = vpop.xlane.xlu0 %783  ;;  %v1186_v35 = vsub.f32 2.0, %v1170_v8 }
 0x3a3   :  { %v1786_v62 = vpop.eup %1785  ;;  %v790_v45 = vpop.xlane.xlu1 %789  ;;  %v805_v9 = vadd.f32 %v784_v4, %v757_v49 }
 0x3a4   :  { %v808_v3 = vadd.f32 %v790_v45, %v760_v57  ;;  %v1202_v37 = vmul.f32 %v1784_v5, %v1186_v35  ;;  %v1173_v0 = vmul.f32 %v1786_v62, %v1141_v2  ;;  %v1142_v50 = vld [vmem:[#allocation4 + $0x30] sm:$0xff] }
 0x3a5   :  { %822 = vst.msk [vmem:[#allocation4 + $0x50] sm:$0xff] %vm227_vm0, %v805_v9  ;;  %v1145_v55 = vld [vmem:[#allocation4 + $0x48] sm:$0xff]  ;;  %1791 = vrcp.f32 %v1142_v50 }
 0x3a6   :  { %825 = vst.msk [vmem:[#allocation4 + $0x68] sm:$0xff] %vm227_vm0, %v808_v3  ;;  %1244 = vperm.xlu1 %1712, %v1202_v37   ;;  %v788_v41 = vpop.xlane.xlu0 %787  ;;  %v1189_v10 = vsub.f32 2.0, %v1173_v0  ;;  %1793 = vrcp.f32 %v1145_v55 }
 0x3a7   :  { %v1788_v29 = vpop.eup %1787  ;;  %v794_v33 = vpop.xlane.xlu1 %793  ;;  %v807_v30 = vadd.f32 %v788_v41, %v759_v61 }
 0x3a8   :  { %v810_v38 = vadd.f32 %v794_v33, %v762_v42  ;;  %v1205_v17 = vmul.f32 %v1786_v62, %v1189_v10  ;;  %v1172_v19 = vmul.f32 %v1788_v29, %v1140_v7  ;;  %v1144_v32 = vld [vmem:[#allocation4 + $0x40] sm:$0xff] }
 0x3a9   :  { %824 = vst.msk [vmem:[#allocation4 + $0x60] sm:$0xff] %vm227_vm0, %v807_v30  ;;  %v1147_v47 = vld [vmem:[#allocation4 + $0x58] sm:$0xff]  ;;  %1795 = vrcp.f32 %v1144_v32 }
 0x3aa   :  { %827 = vst.msk [vmem:[#allocation4 + $0x78] sm:$0xff] %vm227_vm0, %v810_v38  ;;  %1259 = vperm.xlu0 %1711, %v1205_v17   ;;  %v792_v23 = vpop.xlane.xlu0 %791  ;;  %v1188_v48 = vsub.f32 2.0, %v1172_v19  ;;  %1797 = vrcp.f32 %v1147_v47 }
 0x3ab   :  { %v1790_v20 = vpop.eup %1789  ;;  %v809_v26 = vadd.f32 %v792_v23, %v761_v16 }
 0x3ac   :  { %v1204_v44 = vmul.f32 %v1788_v29, %v1188_v48  ;;  %v1175_v51 = vmul.f32 %v1790_v20, %v1143_v58  ;;  %v1146_v60 = vld [vmem:[#allocation4 + $0x50] sm:$0xff] }
 0x3ad   :  { %826 = vst.msk [vmem:[#allocation4 + $0x70] sm:$0xff] %vm227_vm0, %v809_v26  ;;  %v1149_v6 = vld [vmem:[#allocation4 + $0x68] sm:$0xff]  ;;  %1799 = vrcp.f32 %v1146_v60 }
 0x3ae   :  { %1254 = vperm.xlu1 %1712, %v1204_v44   ;;  %v1191_v2 = vsub.f32 2.0, %v1175_v51  ;;  %1801 = vrcp.f32 %v1149_v6 }
 0x3af   :  { %v1792_v12 = vpop.eup %1791 }
 0x3b0   :  { %v1794_v15 = vpop.eup %1793  ;;  %v1207_v1 = vmul.f32 %v1790_v20, %v1191_v2  ;;  %v1174_v11 = vmul.f32 %v1792_v12, %v1142_v50  ;;  %v1148_v40 = vld [vmem:[#allocation4 + $0x60] sm:$0xff] }
 0x3b1   :  { %v1177_v18 = vmul.f32 %v1794_v15, %v1145_v55  ;;  %v1151_v34 = vld [vmem:[#allocation4 + $0x78] sm:$0xff]  ;;  %1803 = vrcp.f32 %v1148_v40 }
 0x3b2   :  { %1269 = vperm.xlu0 %1711, %v1207_v1   ;;  %v1190_v14 = vsub.f32 2.0, %v1174_v11  ;;  %1805 = vrcp.f32 %v1151_v34  ;;  %v847_v23 = vpop.permute.xlu0 %846 }
 0x3b3   :  { %v1796_v25 = vpop.eup %1795  ;;  %v1193_v24 = vsub.f32 2.0, %v1177_v18 }
 0x3b4   :  { %v1798_v36 = vpop.eup %1797  ;;  %v1206_v28 = vmul.f32 %v1792_v12, %v1190_v14  ;;  %v1176_v52 = vmul.f32 %v1796_v25, %v1144_v32  ;;  %v1150_v7 = vld [vmem:[#allocation4 + $0x70] sm:$0xff]  ;;  %v852_v32 = vpop.permute.xlu1 %851  ;;  %v924_v14 = vmul.f32 0.0, %v847_v23 }
 0x3b5   :  { %v1209_v27 = vmul.f32 %v1794_v15, %v1193_v24  ;;  %v1179_v39 = vmul.f32 %v1798_v36, %v1147_v47  ;;  %1807 = vrcp.f32 %v1150_v7 }
 0x3b6   :  { %1264 = vperm.xlu1 %1712, %v1206_v28   ;;  %v1192_v59 = vsub.f32 2.0, %v1176_v52  ;;  %v862_v44 = vpop.permute.xlu0 %861  ;;  %v925_v28 = vmul.f32 0.0, %v852_v32 }
 0x3b7   :  { %v1800_v13 = vpop.eup %1799  ;;  %1279 = vperm.xlu0 %1711, %v1209_v27   ;;  %v1195_v53 = vsub.f32 2.0, %v1179_v39  ;;  %v927_v39 = vmul.f32 0.0, %v862_v44 }
 0x3b8   :  { %v1802_v5 = vpop.eup %1801  ;;  %v1208_v63 = vmul.f32 %v1796_v25, %v1192_v59  ;;  %v1178_v31 = vmul.f32 %v1800_v13, %v1146_v60  ;;  %v857_v48 = vpop.permute.xlu1 %856 }
 0x3b9   :  { %v1211_v54 = vmul.f32 %v1798_v36, %v1195_v53  ;;  %v1181_v46 = vmul.f32 %v1802_v5, %v1149_v6 }
 0x3ba   :  { %1274 = vperm.xlu1 %1712, %v1208_v63   ;;  %v1194_v22 = vsub.f32 2.0, %v1178_v31  ;;  %v872_v60 = vpop.permute.xlu0 %871 }
 0x3bb   :  { %v1804_v8 = vpop.eup %1803  ;;  %1289 = vperm.xlu0 %1711, %v1211_v54   ;;  %v1197_v58 = vsub.f32 2.0, %v1181_v46  ;;  %v929_v46 = vmul.f32 0.0, %v872_v60 }
 0x3bc   :  { %v1806_v49 = vpop.eup %1805  ;;  %v1210_v57 = vmul.f32 %v1800_v13, %v1194_v22  ;;  %v1180_v4 = vmul.f32 %v1804_v8, %v1148_v40  ;;  %v867_v51 = vpop.permute.xlu1 %866 }
 0x3bd   :  { %v1213_v35 = vmul.f32 %v1802_v5, %v1197_v58  ;;  %v1183_v43 = vmul.f32 %v1806_v49, %v1151_v34  ;;  %v926_v5 = vmul.f32 0.0, %v857_v48 }
 0x3be   :  { %1284 = vperm.xlu1 %1712, %v1210_v57   ;;  %v1196_v62 = vsub.f32 2.0, %v1180_v4  ;;  %v882_v2 = vpop.permute.xlu0 %881 }
 0x3bf   :  { %v1808_v45 = vpop.eup %1807  ;;  %1299 = vperm.xlu0 %1711, %v1213_v35   ;;  %v1199_v9 = vsub.f32 2.0, %v1183_v43  ;;  %v931_v43 = vmul.f32 0.0, %v882_v2 }
 0x3c0   :  { %v1212_v56 = vmul.f32 %v1804_v8, %v1196_v62  ;;  %v1182_v3 = vmul.f32 %v1808_v45, %v1150_v7  ;;  %v877_v6 = vpop.permute.xlu1 %876 }
 0x3c1   :  { %v1215_v37 = vmul.f32 %v1806_v49, %v1199_v9  ;;  %v928_v49 = vmul.f32 0.0, %v867_v51 }
 0x3c2   :  { %1294 = vperm.xlu1 %1712, %v1212_v56   ;;  %v1198_v0 = vsub.f32 2.0, %v1182_v3  ;;  %v892_v15 = vpop.permute.xlu0 %891  ;;  %v930_v56 = vmul.f32 0.0, %v877_v6 }
 0x3c3   :  { %1309 = vperm.xlu0 %1711, %v1215_v37   ;;  %v933_v37 = vmul.f32 0.0, %v892_v15 }
 0x3c4   :  { %v1214_v50 = vmul.f32 %v1808_v45, %v1198_v0  ;;  %v887_v12 = vpop.permute.xlu1 %886 }
 0x3c6   :  { %1304 = vperm.xlu1 %1712, %v1214_v50   ;;  %v902_v11 = vpop.permute.xlu0 %901 }
 0x3c8   :  { %v1590_v61 = vpop.f32.mrb[16].mxu0  ;;  %v897_v1 = vpop.permute.xlu1 %896 }
 0x3c9   :  { %v1006_v55 = vpop.f32.mrb[17].mxu0  ;;  %v1086_v7 = vadd.f32 %v1590_v61, %v925_v28 }
 0x3ca   :  { %v912_v18 = vpop.permute.xlu0 %911  ;;  %v1085_v25 = vadd.f32 %v1006_v55, %v924_v14  ;;  %v932_v55 = vmul.f32 0.0, %v887_v12 }
 0x3cb   :  { %v937_v44 = vmul.f32 0.0, %v912_v18 }
 0x3cc   :  { %v2439_v40 = vpop.permute.xlu1 %906 }
 0x3cd   :  { %v936_v6 = vmul.f32 0.0, %v2439_v40 }
 0x3ce   :  { %v922_v24 = vpop.permute.xlu0 %921 }
 0x3cf   :  { %v939_v15 = vmul.f32 0.0, %v922_v24 }
 0x3d0   :  { %v2441_v34 = vpop.permute.xlu1 %916 }
 0x3d1   :  { %v1593_v42 = vpop.f32.mrb[18].mxu0  ;;  %v938_v18 = vmul.f32 0.0, %v2441_v34 }
 0x3d2   :  { %v1016_v41 = vpop.f32.mrb[19].mxu0  ;;  %v1088_v13 = vadd.f32 %v1593_v42, %v927_v39 }
 0x3d3   :  { %v1087_v31 = vadd.f32 %v1016_v41, %v926_v5 }
 0x3d9   :  { %v1596_v10 = vpop.f32.mrb[20].mxu0 }
 0x3da   :  { %v1026_v21 = vpop.f32.mrb[21].mxu0  ;;  %v1090_v8 = vadd.f32 %v1596_v10, %v929_v46  ;;  %v935_v10 = vmul.f32 0.0, %v902_v11 }
 0x3db   :  { %v1089_v4 = vadd.f32 %v1026_v21, %v928_v49 }
 0x3e1   :  { %v1599_v29 = vpop.f32.mrb[22].mxu0 }
 0x3e2   :  { %v1036_v33 = vpop.f32.mrb[23].mxu0  ;;  %v1092_v45 = vadd.f32 %v1599_v29, %v931_v43 }
 0x3e3   :  { %v1091_v0 = vadd.f32 %v1036_v33, %v930_v56 }
 0x3e5   :  { %v2423_v30 = vpop.f32.mrb[24].mxu0 }
 0x3e6   :  { %v2425_v38 = vpop.f32.mrb[25].mxu0  ;;  %v1094_v50 = vadd.f32 %v2423_v30, %v933_v37  ;;  %v934_v30 = vmul.f32 0.0, %v897_v1 }
 0x3e7   :  { %v1093_v29 = vadd.f32 %v2425_v38, %v932_v55 }
 0x3e9   :  { %v2427_v17 = vpop.f32.mrb[26].mxu0 }
 0x3ea   :  { %v2429_v19 = vpop.f32.mrb[27].mxu0  ;;  %v1096_v33 = vadd.f32 %v2427_v17, %v935_v10 }
 0x3eb   :  { %v1095_v60 = vadd.f32 %v2429_v19, %v934_v30 }
 0x3ed   :  { %v2431_v16 = vpop.f32.mrb[28].mxu0 }
 0x3ee   :  { %v2433_v47 = vpop.f32.mrb[29].mxu0  ;;  %v1098_v38 = vadd.f32 %v2431_v16, %v937_v44 }
 0x3ef   :  { %v1097_v11 = vadd.f32 %v2433_v47, %v936_v6 }
 0x3f1   :  { %v2435_v20 = vpop.f32.mrb[30].mxu0 }
 0x3f2   :  { %v2437_v26 = vpop.f32.mrb[31].mxu0  ;;  %v1100_v19 = vadd.f32 %v2435_v20, %v939_v15 }
 0x3f3   :  { %v1099_v24 = vadd.f32 %v2437_v26, %v938_v18 }
 0x419   :  { %v1235_v36 = vpop.permute.xlu1 %1234 }
 0x41a   :  { %v1312_v52 = vmul.f32 %v1235_v36, %v1085_v25 }
 0x41c   :  { %1328 = vst [vmem:[%s2504_s3] sm:$0xff] %v1312_v52 }
 0x41d   :  { %v1240_v27 = vpop.permute.xlu0 %1239 }
 0x41e   :  { %v1313_v59 = vmul.f32 %v1240_v27, %v1086_v7 }
 0x420   :  { %1329 = vst [vmem:[%s2504_s3 + $0x8] sm:$0xff] %v1313_v59 }
 0x421   :  { %v1250_v53 = vpop.permute.xlu0 %1249 }
 0x422   :  { %v1315_v63 = vmul.f32 %v1250_v53, %v1088_v13 }
 0x424   :  { %1331 = vst [vmem:[%s2504_s3 + $0x18] sm:$0xff] %v1315_v63 }
 0x425   :  { %v1245_v54 = vpop.permute.xlu1 %1244 }
 0x426   :  { %v1314_v22 = vmul.f32 %v1245_v54, %v1087_v31 }
 0x428   :  { %1330 = vst [vmem:[%s2504_s3 + $0x10] sm:$0xff] %v1314_v22 }
 0x429   :  { %v1260_v58 = vpop.permute.xlu0 %1259 }
 0x42a   :  { %v1317_v57 = vmul.f32 %v1260_v58, %v1090_v8 }
 0x42c   :  { %1333 = vst [vmem:[%s2504_s3 + $0x28] sm:$0xff] %v1317_v57 }
 0x42d   :  { %v1255_v35 = vpop.permute.xlu1 %1254 }
 0x42e   :  { %v1316_v62 = vmul.f32 %v1255_v35, %v1089_v4 }
 0x430   :  { %1332 = vst [vmem:[%s2504_s3 + $0x20] sm:$0xff] %v1316_v62 }
 0x431   :  { %v1270_v9 = vpop.permute.xlu0 %1269 }
 0x432   :  { %v1319_v3 = vmul.f32 %v1270_v9, %v1092_v45 }
 0x434   :  { %1335 = vst [vmem:[%s2504_s3 + $0x38] sm:$0xff] %v1319_v3 }
 0x435   :  { %v1265_v61 = vpop.permute.xlu1 %1264 }
 0x436   :  { %v1318_v42 = vmul.f32 %v1265_v61, %v1091_v0  ;;  %v1280_v41 = vpop.permute.xlu0 %1279 }
 0x437   :  { %v1321_v21 = vmul.f32 %v1280_v41, %v1094_v50 }
 0x438   :  { %1334 = vst [vmem:[%s2504_s3 + $0x30] sm:$0xff] %v1318_v42 }
 0x439   :  { %1337 = vst [vmem:[%s2504_s3 + $0x48] sm:$0xff] %v1321_v21  ;;  %v1275_v32 = vpop.permute.xlu1 %1274 }
 0x43a   :  { %v1320_v23 = vmul.f32 %v1275_v32, %v1093_v29  ;;  %v1290_v48 = vpop.permute.xlu0 %1289 }
 0x43b   :  { %v1323_v51 = vmul.f32 %v1290_v48, %v1096_v33 }
 0x43c   :  { %1336 = vst [vmem:[%s2504_s3 + $0x40] sm:$0xff] %v1320_v23 }
 0x43d   :  { %1339 = vst [vmem:[%s2504_s3 + $0x58] sm:$0xff] %v1323_v51  ;;  %v1285_v17 = vpop.permute.xlu1 %1284 }
 0x43e   :  { %v1322_v2 = vmul.f32 %v1285_v17, %v1095_v60  ;;  %v1300_v12 = vpop.permute.xlu0 %1299 }
 0x43f   :  { %v1325_v1 = vmul.f32 %v1300_v12, %v1098_v38 }
 0x440   :  { %1338 = vst [vmem:[%s2504_s3 + $0x50] sm:$0xff] %v1322_v2 }
 0x441   :  { %1341 = vst [vmem:[%s2504_s3 + $0x68] sm:$0xff] %v1325_v1  ;;  %v1295_v16 = vpop.permute.xlu1 %1294 }
 0x442   :  { %v1324_v40 = vmul.f32 %v1295_v16, %v1097_v11  ;;  %v1310_v14 = vpop.permute.xlu0 %1309 }
 0x443   :  { %v1327_v25 = vmul.f32 %v1310_v14, %v1100_v19 }
 0x444   :  { %1340 = vst [vmem:[%s2504_s3 + $0x60] sm:$0xff] %v1324_v40 }
 0x445   :  { %1343 = vst [vmem:[%s2504_s3 + $0x78] sm:$0xff] %v1327_v25  ;;  %v1305_v47 = vpop.permute.xlu1 %1304 }
 0x446   :  { %v1326_v20 = vmul.f32 %v1305_v47, %v1099_v24 }
 0x448   :  { %1342 = vst [vmem:[%s2504_s3 + $0x70] sm:$0xff] %v1326_v20 }

</bundles_post_ra>
